<compile_context>
chip_gen: v5e
topology: v5e:2x2
jax: 0.10.0
libtpu: 0.0.40
codegen_flags: <defaults>
</compile_context>

<pallas_src>
import functools
import math

import jax
import jax.numpy as jnp
from jax.experimental import pallas as pl
from jax.experimental.pallas import tpu as pltpu


# ----------------------------------------------------------------------------
# In-kernel helpers
# ----------------------------------------------------------------------------
def _layer_norm(h, gamma, beta):
    mu = jnp.mean(h, axis=-1, keepdims=True)
    var = jnp.mean(jnp.square(h - mu), axis=-1, keepdims=True)
    return (h - mu) * jax.lax.rsqrt(var + 1e-5) * gamma + beta


def _mha(x_bf16, wq, wk, wv, bq, bk, bv, wo, bo, head_scr, *, num_heads,
         mask=None):
    """Multi-head self-attention over (L, D) rows.

    Fused lane-dense Q/K/V projections (one (L,D)@(D,D) bf16 matmul each, f32
    accumulate), per-head softmax(Q K^T [+ mask]) V written into a VMEM slab
    (no concatenate relayouts), then one fused (L,D)@(D,D) output projection.
    The 1/sqrt(head_dim) scale is folded into Wq/bq at init time.
    Returns (L, D) float32.
    """
    q = jnp.dot(x_bf16, wq[...], preferred_element_type=jnp.float32) + bq[...]
    k = jnp.dot(x_bf16, wk[...], preferred_element_type=jnp.float32) + bk[...]
    v = jnp.dot(x_bf16, wv[...], preferred_element_type=jnp.float32) + bv[...]
    L, D = q.shape
    dh = D // num_heads

    qb = q.astype(jnp.bfloat16)
    kb = k.astype(jnp.bfloat16)
    vb = v.astype(jnp.bfloat16)

    # TODO(synk): at realistic sizes (head_dim >= 128) batch all heads into a
    # single dot_general with H as a batch dim so each vmatmul contracts >= 128
    # lanes; at D=32 / dh=8 the MXU is under-filled regardless, so we keep the
    # robust static unroll writing into the VMEM slab.
    for h in range(num_heads):
        sl = slice(h * dh, (h + 1) * dh)
        # scores (L, L) in f32: contract the head dim (no explicit transpose)
        s = jax.lax.dot_general(qb[:, sl], kb[:, sl], (((1,), (1,)), ((), ())),
                                preferred_element_type=jnp.float32)
        if mask is not None:
            # safe only because scores stay f32 and max-subtraction precedes exp
            s = s + mask
        s = s - jnp.max(s, axis=-1, keepdims=True)
        p = jnp.exp(s)
        p = p * pl.reciprocal(jnp.sum(p, axis=-1, keepdims=True), approx=True)
        head_scr[:, sl] = jnp.dot(p.astype(jnp.bfloat16), vb[:, sl],
                                  preferred_element_type=jnp.float32)

    cat = head_scr[...].astype(jnp.bfloat16)                      # (L, D)
    return jnp.dot(cat, wo[...], preferred_element_type=jnp.float32) + bo[...]


# ----------------------------------------------------------------------------
# Fused per-batch-row kernel: BeamSplitterAttention + encoder tail + fc_out
# ----------------------------------------------------------------------------
def _fused_row_kernel(x_ref, offr_ref, offc_ref,
                      wq_c, wk_c, wv_c, bq_c, bk_c, bv_c, wo_c, bo_c,
                      wq_g, wk_g, wv_g, bq_g, bk_g, bv_g, wo_g, bo_g,
                      g1_ref, beta1_ref, w1_ref, b1_ref, w2_ref, b2_ref,
                      g2_ref, beta2_ref, wf_ref, bf_ref,
                      o_ref, head_scr, *, num_heads):
    """One batch row of the full transformer forward.

    x_ref:    (1, S, D) f32 (embeddings*sqrt(D) + positional encoding)
    offr/offc:(S, 1)/(1, S) int32 in-chunk offsets (i % chunk_size)
    W*:       (D_in, D_out) bf16    b*/gamma/beta: (1, D_out) f32
    o_ref:    (1, S, vocab_padded) f32  (lane-dense, padded to 128)
    head_scr: (S, D) f32 VMEM slab for per-head attention outputs
    """
    x = x_ref[0]                                   # (S, D) f32
    xb = x.astype(jnp.bfloat16)

    # -- chunk ("beam splitter") attention: same-offset positions attend -------
    # The strided grouping is expressed as an additive score mask rebuilt
    # in-VMEM from two tiny offset vectors (no S^2 HBM mask read, no gathers).
    mask = jnp.where(offr_ref[...] == offc_ref[...], 0.0, -1e9)
    mask = mask.astype(jnp.float32)
    # TODO(synk): for large chunk_size, regroup in-kernel to
    # (chunk_size, S/chunk_size) and run grouped attention per offset instead of
    # masking; the mask wastes (chunk_size-1)/chunk_size of the score FLOPs.
    chunk_out = _mha(xb, wq_c, wk_c, wv_c, bq_c, bk_c, bv_c, wo_c, bo_c,
                     head_scr, num_heads=num_heads, mask=mask)

    # -- global attention over the full sequence --------------------------------
    # TODO(synk): switch to an online-softmax (flash) formulation with a KV grid
    # axis if S grows beyond a few hundred.
    attn = _mha(chunk_out.astype(jnp.bfloat16),
                wq_g, wk_g, wv_g, bq_g, bk_g, bv_g, wo_g, bo_g,
                head_scr, num_heads=num_heads, mask=None)

    # -- post-norm encoder tail: residual + LN1 + FFN(relu) + residual + LN2 ----
    h = _layer_norm(x + attn, g1_ref[...], beta1_ref[...])
    ff = jnp.dot(h.astype(jnp.bfloat16), w1_ref[...],
                 preferred_element_type=jnp.float32) + b1_ref[...]
    ff = jnp.maximum(ff, 0.0)                      # relu
    ff = jnp.dot(ff.astype(jnp.bfloat16), w2_ref[...],
                 preferred_element_type=jnp.float32) + b2_ref[...]
    h2 = _layer_norm(h + ff, g2_ref[...], beta2_ref[...])

    # -- fc_out to the 128-lane padded vocab (lane-dense store) -----------------
    logits = jnp.dot(h2.astype(jnp.bfloat16), wf_ref[...],
                     preferred_element_type=jnp.float32) + bf_ref[...]
    o_ref[0] = logits.astype(o_ref.dtype)


def fused_transformer_rows(x, offs_row, offs_col, params, *, num_heads,
                           vocab_padded):
    """x: (B, S, D) f32 -> padded logits (B, S, vocab_padded) f32."""
    B, S, D = x.shape
    weights = (*params["chunk_attn"], *params["global_attn"], *params["tail"])
    kernel = functools.partial(_fused_row_kernel, num_heads=num_heads)
    const = lambda a: pl.BlockSpec(a.shape, lambda b: (0,) * a.ndim)
    # grid=(B,) "parallel": maps to both v7x TensorCores (B is even).
    # TODO(synk): on single-TC chips (v5e/v6e) with tiny per-row work, block
    # several batch rows per grid step to amortize the ~0.35us step overhead.
    # TODO(synk): at realistic D/vocab, single-buffer the constant weight specs
    # (pipeline_mode=pl.Buffered(1)) and/or tile fc_out over a vocab grid axis
    # so double-buffered weights stay inside v7x's 64 MiB VMEM.
    return pl.pallas_call(
        kernel,
        out_shape=jax.ShapeDtypeStruct((B, S, vocab_padded), jnp.float32),
        grid=(B,),
        in_specs=[pl.BlockSpec((1, S, D), lambda b: (b, 0, 0)),
                  const(offs_row), const(offs_col)]
                 + [const(w) for w in weights],
        out_specs=pl.BlockSpec((1, S, vocab_padded), lambda b: (b, 0, 0)),
        scratch_shapes=[pltpu.VMEM((S, D), jnp.float32)],
        compiler_params=pltpu.CompilerParams(
            dimension_semantics=("parallel",),
            vmem_limit_bytes=32 * 1024 * 1024),
    )(x, offs_row, offs_col, *weights)


# ----------------------------------------------------------------------------
# Model forward (glue in plain JAX)
# ----------------------------------------------------------------------------
def sinusoidal_pe(seq_len, d_model):
    pos = jnp.arange(seq_len, dtype=jnp.float32)[:, None]
    div = jnp.exp(jnp.arange(0, d_model, 2, dtype=jnp.float32)
                  * (-math.log(10000.0) / d_model))
    pe = jnp.zeros((seq_len, d_model), jnp.float32)
    pe = pe.at[:, 0::2].set(jnp.sin(pos * div))
    pe = pe.at[:, 1::2].set(jnp.cos(pos * div))
    return pe


def single_layer_transformer(tokens, params, *, num_heads, max_len, vocab_size):
    B, S = tokens.shape
    emb_table = params["embedding"]
    D = emb_table.shape[1]
    assert S % max_len == 0, "seq_len must be divisible by max_len (chunk size)"

    # nn.Embedding gather + sqrt(d_model) scale (data-dependent gather in XLA glue)
    x = emb_table[tokens] * jnp.float32(math.sqrt(D))               # (B, S, D) f32
    # PositionalEncoding: sinusoidal table added along the sequence axis
    x = x + sinusoidal_pe(S, D)[None, :, :]
    # TODO(synk): dropout layers are eval-mode identities here (no RNG in forward).

    # In-chunk offsets for the beam-splitter grouping; the (S,S) additive mask is
    # rebuilt in-kernel from these tiny vectors (no S^2 HBM read).
    offs = jnp.arange(S, dtype=jnp.int32) % max_len
    offs_row = offs.reshape(S, 1)
    offs_col = offs.reshape(1, S)

    vp = params["tail"][-1].shape[-1]                               # padded vocab
    logits_p = fused_transformer_rows(x, offs_row, offs_col, params,
                                      num_heads=num_heads, vocab_padded=vp)
    return logits_p[:, :, :vocab_size]


# ----------------------------------------------------------------------------
# Deterministic parameter init (synthetic weights; shapes match the module)
# ----------------------------------------------------------------------------
def init_attn_params(key, d_model, num_heads):
    ks = jax.random.split(key, 4)
    w = lambda k, s: 0.05 * jax.random.normal(k, s, jnp.float32)
    zb = jnp.zeros((1, d_model), jnp.float32)    # torch zero-inits in/out-proj biases
    scale = 1.0 / math.sqrt(d_model // num_heads)
    # The 1/sqrt(head_dim) attention scale is constant-folded into Wq (and bq,
    # which is zero) at init time, so the kernel never multiplies q by it.
    return ((w(ks[0], (d_model, d_model)) * scale).astype(jnp.bfloat16),  # Wq*scale
            w(ks[1], (d_model, d_model)).astype(jnp.bfloat16),            # Wk
            w(ks[2], (d_model, d_model)).astype(jnp.bfloat16),            # Wv
            zb, zb, zb,                                                   # bq, bk, bv
            w(ks[3], (d_model, d_model)).astype(jnp.bfloat16),            # Wo
            zb)                                                           # bo


def init_params(key, vocab_size, d_model, num_heads):
    d_ff = 4 * d_model
    vp = ((vocab_size + 127) // 128) * 128       # lane-dense fc_out output width
    ks = jax.random.split(key, 6)
    wf32 = lambda k, s: 0.05 * jax.random.normal(k, s, jnp.float32)
    wbf = lambda k, s: wf32(k, s).astype(jnp.bfloat16)
    fc_w = (jnp.zeros((d_model, vp), jnp.float32)
            .at[:, :vocab_size].set(wf32(ks[5], (d_model, vocab_size)))
            .astype(jnp.bfloat16))
    return {
        "embedding": wf32(ks[0], (vocab_size, d_model)),
        "chunk_attn": init_attn_params(ks[1], d_model, num_heads),
        "global_attn": init_attn_params(ks[2], d_model, num_heads),
        "tail": (
            jnp.ones((1, d_model), jnp.float32),     # LayerNorm1 gamma
            jnp.zeros((1, d_model), jnp.float32),    # LayerNorm1 beta
            wbf(ks[3], (d_model, d_ff)),             # linear1 W
            jnp.zeros((1, d_ff), jnp.float32),       # linear1 b
            wbf(ks[4], (d_ff, d_model)),             # linear2 W
            jnp.zeros((1, d_model), jnp.float32),    # linear2 b
            jnp.ones((1, d_model), jnp.float32),     # LayerNorm2 gamma
            jnp.zeros((1, d_model), jnp.float32),    # LayerNorm2 beta
            fc_w,                                    # fc_out W (zero-padded to vp)
            jnp.zeros((1, vp), jnp.float32),         # fc_out b (padded)
        ),
    }


if __name__ == "__main__":
    vocab_size = 64
    d_model = 32
    num_heads = 4
    max_len = 4          # BeamSplitterAttention chunk size; S must be divisible by it
    B, S = 2, 8

    key = jax.random.PRNGKey(0)
    params = init_params(key, vocab_size, d_model, num_heads)
    tokens = jax.random.randint(jax.random.fold_in(key, 7), (B, S), 0, vocab_size,
                                dtype=jnp.int32)

    fwd = jax.jit(functools.partial(single_layer_transformer,
                                    num_heads=num_heads, max_len=max_len,
                                    vocab_size=vocab_size))
    out = fwd(tokens, params)
    jax.block_until_ready(out)
    assert out.shape == (B, S, vocab_size), out.shape
    assert bool(jnp.all(jnp.isfinite(out)))
    # NOTE: bf16 matmuls + approx reciprocal in softmax -> results match an fp32
    # torch reference only to ~1e-2 relative tolerance (inference-grade).
    print("KERNEL_OK")
</pallas_src>

<mosaic_0001>
module attributes {stable_mosaic.version = 11 : i64} {
  func.func @_fused_row_kernel(%arg0: i32, %arg1: memref<1x8x32xf32, #tpu.memory_space<vmem>>, %arg2: memref<8x1xi32, #tpu.memory_space<vmem>>, %arg3: memref<1x8xi32, #tpu.memory_space<vmem>>, %arg4: memref<32x32xbf16, #tpu.memory_space<vmem>>, %arg5: memref<32x32xbf16, #tpu.memory_space<vmem>>, %arg6: memref<32x32xbf16, #tpu.memory_space<vmem>>, %arg7: memref<1x32xf32, #tpu.memory_space<vmem>>, %arg8: memref<1x32xf32, #tpu.memory_space<vmem>>, %arg9: memref<1x32xf32, #tpu.memory_space<vmem>>, %arg10: memref<32x32xbf16, #tpu.memory_space<vmem>>, %arg11: memref<1x32xf32, #tpu.memory_space<vmem>>, %arg12: memref<32x32xbf16, #tpu.memory_space<vmem>>, %arg13: memref<32x32xbf16, #tpu.memory_space<vmem>>, %arg14: memref<32x32xbf16, #tpu.memory_space<vmem>>, %arg15: memref<1x32xf32, #tpu.memory_space<vmem>>, %arg16: memref<1x32xf32, #tpu.memory_space<vmem>>, %arg17: memref<1x32xf32, #tpu.memory_space<vmem>>, %arg18: memref<32x32xbf16, #tpu.memory_space<vmem>>, %arg19: memref<1x32xf32, #tpu.memory_space<vmem>>, %arg20: memref<1x32xf32, #tpu.memory_space<vmem>>, %arg21: memref<1x32xf32, #tpu.memory_space<vmem>>, %arg22: memref<32x128xbf16, #tpu.memory_space<vmem>>, %arg23: memref<1x128xf32, #tpu.memory_space<vmem>>, %arg24: memref<128x32xbf16, #tpu.memory_space<vmem>>, %arg25: memref<1x32xf32, #tpu.memory_space<vmem>>, %arg26: memref<1x32xf32, #tpu.memory_space<vmem>>, %arg27: memref<1x32xf32, #tpu.memory_space<vmem>>, %arg28: memref<32x128xbf16, #tpu.memory_space<vmem>>, %arg29: memref<1x128xf32, #tpu.memory_space<vmem>>, %arg30: memref<1x8x128xf32, #tpu.memory_space<vmem>>, %arg31: memref<8x32xf32, #tpu.memory_space<vmem>>) attributes {dimension_semantics = [#tpu.dimension_semantics<parallel>], iteration_bounds = array<i64: 2>, scalar_prefetch = 0 : i64, scratch_operands = 1 : i64, tpu.core_type = #tpu.core_type<tc>, window_params = [{transform_indices = @transform_0, window_bounds = array<i64: 1, 8, 32>}, {pipeline_mode = #tpu.pipeline_mode<synchronous>, transform_indices = @transform_1, window_bounds = array<i64: 8, 1>}, {pipeline_mode = #tpu.pipeline_mode<synchronous>, transform_indices = @transform_2, window_bounds = array<i64: 1, 8>}, {pipeline_mode = #tpu.pipeline_mode<synchronous>, transform_indices = @transform_3, window_bounds = array<i64: 32, 32>}, {pipeline_mode = #tpu.pipeline_mode<synchronous>, transform_indices = @transform_4, window_bounds = array<i64: 32, 32>}, {pipeline_mode = #tpu.pipeline_mode<synchronous>, transform_indices = @transform_5, window_bounds = array<i64: 32, 32>}, {pipeline_mode = #tpu.pipeline_mode<synchronous>, transform_indices = @transform_6, window_bounds = array<i64: 1, 32>}, {pipeline_mode = #tpu.pipeline_mode<synchronous>, transform_indices = @transform_7, window_bounds = array<i64: 1, 32>}, {pipeline_mode = #tpu.pipeline_mode<synchronous>, transform_indices = @transform_8, window_bounds = array<i64: 1, 32>}, {pipeline_mode = #tpu.pipeline_mode<synchronous>, transform_indices = @transform_9, window_bounds = array<i64: 32, 32>}, {pipeline_mode = #tpu.pipeline_mode<synchronous>, transform_indices = @transform_10, window_bounds = array<i64: 1, 32>}, {pipeline_mode = #tpu.pipeline_mode<synchronous>, transform_indices = @transform_11, window_bounds = array<i64: 32, 32>}, {pipeline_mode = #tpu.pipeline_mode<synchronous>, transform_indices = @transform_12, window_bounds = array<i64: 32, 32>}, {pipeline_mode = #tpu.pipeline_mode<synchronous>, transform_indices = @transform_13, window_bounds = array<i64: 32, 32>}, {pipeline_mode = #tpu.pipeline_mode<synchronous>, transform_indices = @transform_14, window_bounds = array<i64: 1, 32>}, {pipeline_mode = #tpu.pipeline_mode<synchronous>, transform_indices = @transform_15, window_bounds = array<i64: 1, 32>}, {pipeline_mode = #tpu.pipeline_mode<synchronous>, transform_indices = @transform_16, window_bounds = array<i64: 1, 32>}, {pipeline_mode = #tpu.pipeline_mode<synchronous>, transform_indices = @transform_17, window_bounds = array<i64: 32, 32>}, {pipeline_mode = #tpu.pipeline_mode<synchronous>, transform_indices = @transform_18, window_bounds = array<i64: 1, 32>}, {pipeline_mode = #tpu.pipeline_mode<synchronous>, transform_indices = @transform_19, window_bounds = array<i64: 1, 32>}, {pipeline_mode = #tpu.pipeline_mode<synchronous>, transform_indices = @transform_20, window_bounds = array<i64: 1, 32>}, {pipeline_mode = #tpu.pipeline_mode<synchronous>, transform_indices = @transform_21, window_bounds = array<i64: 32, 128>}, {pipeline_mode = #tpu.pipeline_mode<synchronous>, transform_indices = @transform_22, window_bounds = array<i64: 1, 128>}, {pipeline_mode = #tpu.pipeline_mode<synchronous>, transform_indices = @transform_23, window_bounds = array<i64: 128, 32>}, {pipeline_mode = #tpu.pipeline_mode<synchronous>, transform_indices = @transform_24, window_bounds = array<i64: 1, 32>}, {pipeline_mode = #tpu.pipeline_mode<synchronous>, transform_indices = @transform_25, window_bounds = array<i64: 1, 32>}, {pipeline_mode = #tpu.pipeline_mode<synchronous>, transform_indices = @transform_26, window_bounds = array<i64: 1, 32>}, {pipeline_mode = #tpu.pipeline_mode<synchronous>, transform_indices = @transform_27, window_bounds = array<i64: 32, 128>}, {pipeline_mode = #tpu.pipeline_mode<synchronous>, transform_indices = @transform_28, window_bounds = array<i64: 1, 128>}, {transform_indices = @transform_29, window_bounds = array<i64: 1, 8, 128>}]} {
    %c0 = arith.constant 0 : index
    %c0_0 = arith.constant 0 : index
    %c0_1 = arith.constant 0 : index
    %0 = vector.load %arg1[%c0, %c0_0, %c0_1] : memref<1x8x32xf32, #tpu.memory_space<vmem>>, vector<1x8x32xf32>
    %1 = vector.shape_cast %0 : vector<1x8x32xf32> to vector<8x32xf32>
    %2 = arith.truncf %1 : vector<8x32xf32> to vector<8x32xbf16>
    %c0_2 = arith.constant 0 : index
    %c0_3 = arith.constant 0 : index
    %3 = vector.load %arg2[%c0_2, %c0_3] : memref<8x1xi32, #tpu.memory_space<vmem>>, vector<8x1xi32>
    %c0_4 = arith.constant 0 : index
    %c0_5 = arith.constant 0 : index
    %4 = vector.load %arg3[%c0_4, %c0_5] : memref<1x8xi32, #tpu.memory_space<vmem>>, vector<1x8xi32>
    %5 = vector.broadcast %3 : vector<8x1xi32> to vector<8x8xi32>
    %6 = vector.broadcast %4 : vector<1x8xi32> to vector<8x8xi32>
    %7 = arith.cmpi eq, %5, %6 : vector<8x8xi32>
    %cst = arith.constant 0.000000e+00 : f32
    %cst_6 = arith.constant -1.000000e+09 : f32
    %8 = vector.broadcast %cst : f32 to vector<8x8xf32>
    %9 = vector.broadcast %cst_6 : f32 to vector<8x8xf32>
    %10 = arith.select %7, %8, %9 : vector<8x8xi1>, vector<8x8xf32>
    %c0_7 = arith.constant 0 : index
    %c0_8 = arith.constant 0 : index
    %11 = vector.load %arg4[%c0_7, %c0_8] : memref<32x32xbf16, #tpu.memory_space<vmem>>, vector<32x32xbf16>
    %cst_9 = arith.constant dense<0.000000e+00> : vector<8x32xf32>
    %12 = tpu.matmul %2, %11, %cst_9 {dimension_numbers = #tpu.dot_dimension_numbers<[1], [0], [0], [1], [0, 0, 1, 1], [], []>} : vector<8x32xbf16>, vector<32x32xbf16>, vector<8x32xf32> -> vector<8x32xf32>
    %c0_10 = arith.constant 0 : index
    %c0_11 = arith.constant 0 : index
    %13 = vector.load %arg7[%c0_10, %c0_11] : memref<1x32xf32, #tpu.memory_space<vmem>>, vector<1x32xf32>
    %14 = vector.broadcast %13 : vector<1x32xf32> to vector<8x32xf32>
    %15 = arith.addf %12, %14 : vector<8x32xf32>
    %c0_12 = arith.constant 0 : index
    %c0_13 = arith.constant 0 : index
    %16 = vector.load %arg5[%c0_12, %c0_13] : memref<32x32xbf16, #tpu.memory_space<vmem>>, vector<32x32xbf16>
    %cst_14 = arith.constant dense<0.000000e+00> : vector<8x32xf32>
    %17 = tpu.matmul %2, %16, %cst_14 {dimension_numbers = #tpu.dot_dimension_numbers<[1], [0], [0], [1], [0, 0, 1, 1], [], []>} : vector<8x32xbf16>, vector<32x32xbf16>, vector<8x32xf32> -> vector<8x32xf32>
    %c0_15 = arith.constant 0 : index
    %c0_16 = arith.constant 0 : index
    %18 = vector.load %arg8[%c0_15, %c0_16] : memref<1x32xf32, #tpu.memory_space<vmem>>, vector<1x32xf32>
    %19 = vector.broadcast %18 : vector<1x32xf32> to vector<8x32xf32>
    %20 = arith.addf %17, %19 : vector<8x32xf32>
    %c0_17 = arith.constant 0 : index
    %c0_18 = arith.constant 0 : index
    %21 = vector.load %arg6[%c0_17, %c0_18] : memref<32x32xbf16, #tpu.memory_space<vmem>>, vector<32x32xbf16>
    %cst_19 = arith.constant dense<0.000000e+00> : vector<8x32xf32>
    %22 = tpu.matmul %2, %21, %cst_19 {dimension_numbers = #tpu.dot_dimension_numbers<[1], [0], [0], [1], [0, 0, 1, 1], [], []>} : vector<8x32xbf16>, vector<32x32xbf16>, vector<8x32xf32> -> vector<8x32xf32>
    %c0_20 = arith.constant 0 : index
    %c0_21 = arith.constant 0 : index
    %23 = vector.load %arg9[%c0_20, %c0_21] : memref<1x32xf32, #tpu.memory_space<vmem>>, vector<1x32xf32>
    %24 = vector.broadcast %23 : vector<1x32xf32> to vector<8x32xf32>
    %25 = arith.addf %22, %24 : vector<8x32xf32>
    %26 = arith.truncf %15 : vector<8x32xf32> to vector<8x32xbf16>
    %27 = arith.truncf %20 : vector<8x32xf32> to vector<8x32xbf16>
    %28 = arith.truncf %25 : vector<8x32xf32> to vector<8x32xbf16>
    %29 = vector.extract_strided_slice %26 {offsets = [0, 0], sizes = [8, 8], strides = [1, 1]} : vector<8x32xbf16> to vector<8x8xbf16>
    %30 = vector.extract_strided_slice %27 {offsets = [0, 0], sizes = [8, 8], strides = [1, 1]} : vector<8x32xbf16> to vector<8x8xbf16>
    %cst_22 = arith.constant dense<0.000000e+00> : vector<8x8xf32>
    %31 = tpu.matmul %29, %30, %cst_22 {dimension_numbers = #tpu.dot_dimension_numbers<[1], [1], [0], [0], [0, 0, 1, 0], [], []>} : vector<8x8xbf16>, vector<8x8xbf16>, vector<8x8xf32> -> vector<8x8xf32>
    %32 = arith.addf %31, %10 : vector<8x8xf32>
    %cst_23 = arith.constant dense<0xFF800000> : vector<8xf32>
    %33 = vector.multi_reduction <maximumf>, %32, %cst_23 [1] : vector<8x8xf32> to vector<8xf32>
    %34 = vector.shape_cast %33 : vector<8xf32> to vector<8x1xf32>
    %35 = vector.broadcast %34 : vector<8x1xf32> to vector<8x8xf32>
    %36 = arith.subf %32, %35 : vector<8x8xf32>
    %37 = math.exp %36 : vector<8x8xf32>
    %cst_24 = arith.constant dense<0.000000e+00> : vector<8xf32>
    %38 = vector.multi_reduction <add>, %37, %cst_24 [1] : vector<8x8xf32> to vector<8xf32>
    %39 = vector.shape_cast %38 : vector<8xf32> to vector<8x1xf32>
    %40 = tpu.reciprocal %39 {approx = true} : vector<8x1xf32> -> vector<8x1xf32>
    %41 = vector.broadcast %40 : vector<8x1xf32> to vector<8x8xf32>
    %42 = arith.mulf %37, %41 : vector<8x8xf32>
    %43 = arith.truncf %42 : vector<8x8xf32> to vector<8x8xbf16>
    %44 = vector.extract_strided_slice %28 {offsets = [0, 0], sizes = [8, 8], strides = [1, 1]} : vector<8x32xbf16> to vector<8x8xbf16>
    %cst_25 = arith.constant dense<0.000000e+00> : vector<8x8xf32>
    %45 = tpu.matmul %43, %44, %cst_25 {dimension_numbers = #tpu.dot_dimension_numbers<[1], [0], [0], [1], [0, 0, 1, 1], [], []>} : vector<8x8xbf16>, vector<8x8xbf16>, vector<8x8xf32> -> vector<8x8xf32>
    %c0_26 = arith.constant 0 : index
    %c0_27 = arith.constant 0 : index
    %46 = vector.load %arg31[%c0_26, %c0_27] : memref<8x32xf32, #tpu.memory_space<vmem>>, vector<8x8xf32>
    tpu.vector_store %arg31[%c0_26, %c0_27], %45 {strides = array<i32>} : memref<8x32xf32, #tpu.memory_space<vmem>>, vector<8x8xf32>,
    %47 = vector.extract_strided_slice %26 {offsets = [0, 8], sizes = [8, 8], strides = [1, 1]} : vector<8x32xbf16> to vector<8x8xbf16>
    %48 = vector.extract_strided_slice %27 {offsets = [0, 8], sizes = [8, 8], strides = [1, 1]} : vector<8x32xbf16> to vector<8x8xbf16>
    %cst_28 = arith.constant dense<0.000000e+00> : vector<8x8xf32>
    %49 = tpu.matmul %47, %48, %cst_28 {dimension_numbers = #tpu.dot_dimension_numbers<[1], [1], [0], [0], [0, 0, 1, 0], [], []>} : vector<8x8xbf16>, vector<8x8xbf16>, vector<8x8xf32> -> vector<8x8xf32>
    %50 = arith.addf %49, %10 : vector<8x8xf32>
    %cst_29 = arith.constant dense<0xFF800000> : vector<8xf32>
    %51 = vector.multi_reduction <maximumf>, %50, %cst_29 [1] : vector<8x8xf32> to vector<8xf32>
    %52 = vector.shape_cast %51 : vector<8xf32> to vector<8x1xf32>
    %53 = vector.broadcast %52 : vector<8x1xf32> to vector<8x8xf32>
    %54 = arith.subf %50, %53 : vector<8x8xf32>
    %55 = math.exp %54 : vector<8x8xf32>
    %cst_30 = arith.constant dense<0.000000e+00> : vector<8xf32>
    %56 = vector.multi_reduction <add>, %55, %cst_30 [1] : vector<8x8xf32> to vector<8xf32>
    %57 = vector.shape_cast %56 : vector<8xf32> to vector<8x1xf32>
    %58 = tpu.reciprocal %57 {approx = true} : vector<8x1xf32> -> vector<8x1xf32>
    %59 = vector.broadcast %58 : vector<8x1xf32> to vector<8x8xf32>
    %60 = arith.mulf %55, %59 : vector<8x8xf32>
    %61 = arith.truncf %60 : vector<8x8xf32> to vector<8x8xbf16>
    %62 = vector.extract_strided_slice %28 {offsets = [0, 8], sizes = [8, 8], strides = [1, 1]} : vector<8x32xbf16> to vector<8x8xbf16>
    %cst_31 = arith.constant dense<0.000000e+00> : vector<8x8xf32>
    %63 = tpu.matmul %61, %62, %cst_31 {dimension_numbers = #tpu.dot_dimension_numbers<[1], [0], [0], [1], [0, 0, 1, 1], [], []>} : vector<8x8xbf16>, vector<8x8xbf16>, vector<8x8xf32> -> vector<8x8xf32>
    %c0_32 = arith.constant 0 : index
    %c8 = arith.constant 8 : index
    %64 = vector.load %arg31[%c0_32, %c8] : memref<8x32xf32, #tpu.memory_space<vmem>>, vector<8x8xf32>
    tpu.vector_store %arg31[%c0_32, %c8], %63 {strides = array<i32>} : memref<8x32xf32, #tpu.memory_space<vmem>>, vector<8x8xf32>,
    %65 = vector.extract_strided_slice %26 {offsets = [0, 16], sizes = [8, 8], strides = [1, 1]} : vector<8x32xbf16> to vector<8x8xbf16>
    %66 = vector.extract_strided_slice %27 {offsets = [0, 16], sizes = [8, 8], strides = [1, 1]} : vector<8x32xbf16> to vector<8x8xbf16>
    %cst_33 = arith.constant dense<0.000000e+00> : vector<8x8xf32>
    %67 = tpu.matmul %65, %66, %cst_33 {dimension_numbers = #tpu.dot_dimension_numbers<[1], [1], [0], [0], [0, 0, 1, 0], [], []>} : vector<8x8xbf16>, vector<8x8xbf16>, vector<8x8xf32> -> vector<8x8xf32>
    %68 = arith.addf %67, %10 : vector<8x8xf32>
    %cst_34 = arith.constant dense<0xFF800000> : vector<8xf32>
    %69 = vector.multi_reduction <maximumf>, %68, %cst_34 [1] : vector<8x8xf32> to vector<8xf32>
    %70 = vector.shape_cast %69 : vector<8xf32> to vector<8x1xf32>
    %71 = vector.broadcast %70 : vector<8x1xf32> to vector<8x8xf32>
    %72 = arith.subf %68, %71 : vector<8x8xf32>
    %73 = math.exp %72 : vector<8x8xf32>
    %cst_35 = arith.constant dense<0.000000e+00> : vector<8xf32>
    %74 = vector.multi_reduction <add>, %73, %cst_35 [1] : vector<8x8xf32> to vector<8xf32>
    %75 = vector.shape_cast %74 : vector<8xf32> to vector<8x1xf32>
    %76 = tpu.reciprocal %75 {approx = true} : vector<8x1xf32> -> vector<8x1xf32>
    %77 = vector.broadcast %76 : vector<8x1xf32> to vector<8x8xf32>
    %78 = arith.mulf %73, %77 : vector<8x8xf32>
    %79 = arith.truncf %78 : vector<8x8xf32> to vector<8x8xbf16>
    %80 = vector.extract_strided_slice %28 {offsets = [0, 16], sizes = [8, 8], strides = [1, 1]} : vector<8x32xbf16> to vector<8x8xbf16>
    %cst_36 = arith.constant dense<0.000000e+00> : vector<8x8xf32>
    %81 = tpu.matmul %79, %80, %cst_36 {dimension_numbers = #tpu.dot_dimension_numbers<[1], [0], [0], [1], [0, 0, 1, 1], [], []>} : vector<8x8xbf16>, vector<8x8xbf16>, vector<8x8xf32> -> vector<8x8xf32>
    %c0_37 = arith.constant 0 : index
    %c16 = arith.constant 16 : index
    %82 = vector.load %arg31[%c0_37, %c16] : memref<8x32xf32, #tpu.memory_space<vmem>>, vector<8x8xf32>
    tpu.vector_store %arg31[%c0_37, %c16], %81 {strides = array<i32>} : memref<8x32xf32, #tpu.memory_space<vmem>>, vector<8x8xf32>,
    %83 = vector.extract_strided_slice %26 {offsets = [0, 24], sizes = [8, 8], strides = [1, 1]} : vector<8x32xbf16> to vector<8x8xbf16>
    %84 = vector.extract_strided_slice %27 {offsets = [0, 24], sizes = [8, 8], strides = [1, 1]} : vector<8x32xbf16> to vector<8x8xbf16>
    %cst_38 = arith.constant dense<0.000000e+00> : vector<8x8xf32>
    %85 = tpu.matmul %83, %84, %cst_38 {dimension_numbers = #tpu.dot_dimension_numbers<[1], [1], [0], [0], [0, 0, 1, 0], [], []>} : vector<8x8xbf16>, vector<8x8xbf16>, vector<8x8xf32> -> vector<8x8xf32>
    %86 = arith.addf %85, %10 : vector<8x8xf32>
    %cst_39 = arith.constant dense<0xFF800000> : vector<8xf32>
    %87 = vector.multi_reduction <maximumf>, %86, %cst_39 [1] : vector<8x8xf32> to vector<8xf32>
    %88 = vector.shape_cast %87 : vector<8xf32> to vector<8x1xf32>
    %89 = vector.broadcast %88 : vector<8x1xf32> to vector<8x8xf32>
    %90 = arith.subf %86, %89 : vector<8x8xf32>
    %91 = math.exp %90 : vector<8x8xf32>
    %cst_40 = arith.constant dense<0.000000e+00> : vector<8xf32>
    %92 = vector.multi_reduction <add>, %91, %cst_40 [1] : vector<8x8xf32> to vector<8xf32>
    %93 = vector.shape_cast %92 : vector<8xf32> to vector<8x1xf32>
    %94 = tpu.reciprocal %93 {approx = true} : vector<8x1xf32> -> vector<8x1xf32>
    %95 = vector.broadcast %94 : vector<8x1xf32> to vector<8x8xf32>
    %96 = arith.mulf %91, %95 : vector<8x8xf32>
    %97 = arith.truncf %96 : vector<8x8xf32> to vector<8x8xbf16>
    %98 = vector.extract_strided_slice %28 {offsets = [0, 24], sizes = [8, 8], strides = [1, 1]} : vector<8x32xbf16> to vector<8x8xbf16>
    %cst_41 = arith.constant dense<0.000000e+00> : vector<8x8xf32>
    %99 = tpu.matmul %97, %98, %cst_41 {dimension_numbers = #tpu.dot_dimension_numbers<[1], [0], [0], [1], [0, 0, 1, 1], [], []>} : vector<8x8xbf16>, vector<8x8xbf16>, vector<8x8xf32> -> vector<8x8xf32>
    %c0_42 = arith.constant 0 : index
    %c24 = arith.constant 24 : index
    %100 = vector.load %arg31[%c0_42, %c24] : memref<8x32xf32, #tpu.memory_space<vmem>>, vector<8x8xf32>
    tpu.vector_store %arg31[%c0_42, %c24], %99 {strides = array<i32>} : memref<8x32xf32, #tpu.memory_space<vmem>>, vector<8x8xf32>,
    %c0_43 = arith.constant 0 : index
    %c0_44 = arith.constant 0 : index
    %101 = vector.load %arg31[%c0_43, %c0_44] : memref<8x32xf32, #tpu.memory_space<vmem>>, vector<8x32xf32>
    %102 = arith.truncf %101 : vector<8x32xf32> to vector<8x32xbf16>
    %c0_45 = arith.constant 0 : index
    %c0_46 = arith.constant 0 : index
    %103 = vector.load %arg10[%c0_45, %c0_46] : memref<32x32xbf16, #tpu.memory_space<vmem>>, vector<32x32xbf16>
    %cst_47 = arith.constant dense<0.000000e+00> : vector<8x32xf32>
    %104 = tpu.matmul %102, %103, %cst_47 {dimension_numbers = #tpu.dot_dimension_numbers<[1], [0], [0], [1], [0, 0, 1, 1], [], []>} : vector<8x32xbf16>, vector<32x32xbf16>, vector<8x32xf32> -> vector<8x32xf32>
    %c0_48 = arith.constant 0 : index
    %c0_49 = arith.constant 0 : index
    %105 = vector.load %arg11[%c0_48, %c0_49] : memref<1x32xf32, #tpu.memory_space<vmem>>, vector<1x32xf32>
    %106 = vector.broadcast %105 : vector<1x32xf32> to vector<8x32xf32>
    %107 = arith.addf %104, %106 : vector<8x32xf32>
    %108 = arith.truncf %107 : vector<8x32xf32> to vector<8x32xbf16>
    %c0_50 = arith.constant 0 : index
    %c0_51 = arith.constant 0 : index
    %109 = vector.load %arg12[%c0_50, %c0_51] : memref<32x32xbf16, #tpu.memory_space<vmem>>, vector<32x32xbf16>
    %cst_52 = arith.constant dense<0.000000e+00> : vector<8x32xf32>
    %110 = tpu.matmul %108, %109, %cst_52 {dimension_numbers = #tpu.dot_dimension_numbers<[1], [0], [0], [1], [0, 0, 1, 1], [], []>} : vector<8x32xbf16>, vector<32x32xbf16>, vector<8x32xf32> -> vector<8x32xf32>
    %c0_53 = arith.constant 0 : index
    %c0_54 = arith.constant 0 : index
    %111 = vector.load %arg15[%c0_53, %c0_54] : memref<1x32xf32, #tpu.memory_space<vmem>>, vector<1x32xf32>
    %112 = vector.broadcast %111 : vector<1x32xf32> to vector<8x32xf32>
    %113 = arith.addf %110, %112 : vector<8x32xf32>
    %c0_55 = arith.constant 0 : index
    %c0_56 = arith.constant 0 : index
    %114 = vector.load %arg13[%c0_55, %c0_56] : memref<32x32xbf16, #tpu.memory_space<vmem>>, vector<32x32xbf16>
    %cst_57 = arith.constant dense<0.000000e+00> : vector<8x32xf32>
    %115 = tpu.matmul %108, %114, %cst_57 {dimension_numbers = #tpu.dot_dimension_numbers<[1], [0], [0], [1], [0, 0, 1, 1], [], []>} : vector<8x32xbf16>, vector<32x32xbf16>, vector<8x32xf32> -> vector<8x32xf32>
    %c0_58 = arith.constant 0 : index
    %c0_59 = arith.constant 0 : index
    %116 = vector.load %arg16[%c0_58, %c0_59] : memref<1x32xf32, #tpu.memory_space<vmem>>, vector<1x32xf32>
    %117 = vector.broadcast %116 : vector<1x32xf32> to vector<8x32xf32>
    %118 = arith.addf %115, %117 : vector<8x32xf32>
    %c0_60 = arith.constant 0 : index
    %c0_61 = arith.constant 0 : index
    %119 = vector.load %arg14[%c0_60, %c0_61] : memref<32x32xbf16, #tpu.memory_space<vmem>>, vector<32x32xbf16>
    %cst_62 = arith.constant dense<0.000000e+00> : vector<8x32xf32>
    %120 = tpu.matmul %108, %119, %cst_62 {dimension_numbers = #tpu.dot_dimension_numbers<[1], [0], [0], [1], [0, 0, 1, 1], [], []>} : vector<8x32xbf16>, vector<32x32xbf16>, vector<8x32xf32> -> vector<8x32xf32>
    %c0_63 = arith.constant 0 : index
    %c0_64 = arith.constant 0 : index
    %121 = vector.load %arg17[%c0_63, %c0_64] : memref<1x32xf32, #tpu.memory_space<vmem>>, vector<1x32xf32>
    %122 = vector.broadcast %121 : vector<1x32xf32> to vector<8x32xf32>
    %123 = arith.addf %120, %122 : vector<8x32xf32>
    %124 = arith.truncf %113 : vector<8x32xf32> to vector<8x32xbf16>
    %125 = arith.truncf %118 : vector<8x32xf32> to vector<8x32xbf16>
    %126 = arith.truncf %123 : vector<8x32xf32> to vector<8x32xbf16>
    %127 = vector.extract_strided_slice %124 {offsets = [0, 0], sizes = [8, 8], strides = [1, 1]} : vector<8x32xbf16> to vector<8x8xbf16>
    %128 = vector.extract_strided_slice %125 {offsets = [0, 0], sizes = [8, 8], strides = [1, 1]} : vector<8x32xbf16> to vector<8x8xbf16>
    %cst_65 = arith.constant dense<0.000000e+00> : vector<8x8xf32>
    %129 = tpu.matmul %127, %128, %cst_65 {dimension_numbers = #tpu.dot_dimension_numbers<[1], [1], [0], [0], [0, 0, 1, 0], [], []>} : vector<8x8xbf16>, vector<8x8xbf16>, vector<8x8xf32> -> vector<8x8xf32>
    %cst_66 = arith.constant dense<0xFF800000> : vector<8xf32>
    %130 = vector.multi_reduction <maximumf>, %129, %cst_66 [1] : vector<8x8xf32> to vector<8xf32>
    %131 = vector.shape_cast %130 : vector<8xf32> to vector<8x1xf32>
    %132 = vector.broadcast %131 : vector<8x1xf32> to vector<8x8xf32>
    %133 = arith.subf %129, %132 : vector<8x8xf32>
    %134 = math.exp %133 : vector<8x8xf32>
    %cst_67 = arith.constant dense<0.000000e+00> : vector<8xf32>
    %135 = vector.multi_reduction <add>, %134, %cst_67 [1] : vector<8x8xf32> to vector<8xf32>
    %136 = vector.shape_cast %135 : vector<8xf32> to vector<8x1xf32>
    %137 = tpu.reciprocal %136 {approx = true} : vector<8x1xf32> -> vector<8x1xf32>
    %138 = vector.broadcast %137 : vector<8x1xf32> to vector<8x8xf32>
    %139 = arith.mulf %134, %138 : vector<8x8xf32>
    %140 = arith.truncf %139 : vector<8x8xf32> to vector<8x8xbf16>
    %141 = vector.extract_strided_slice %126 {offsets = [0, 0], sizes = [8, 8], strides = [1, 1]} : vector<8x32xbf16> to vector<8x8xbf16>
    %cst_68 = arith.constant dense<0.000000e+00> : vector<8x8xf32>
    %142 = tpu.matmul %140, %141, %cst_68 {dimension_numbers = #tpu.dot_dimension_numbers<[1], [0], [0], [1], [0, 0, 1, 1], [], []>} : vector<8x8xbf16>, vector<8x8xbf16>, vector<8x8xf32> -> vector<8x8xf32>
    %c0_69 = arith.constant 0 : index
    %c0_70 = arith.constant 0 : index
    %143 = vector.load %arg31[%c0_69, %c0_70] : memref<8x32xf32, #tpu.memory_space<vmem>>, vector<8x8xf32>
    tpu.vector_store %arg31[%c0_69, %c0_70], %142 {strides = array<i32>} : memref<8x32xf32, #tpu.memory_space<vmem>>, vector<8x8xf32>,
    %144 = vector.extract_strided_slice %124 {offsets = [0, 8], sizes = [8, 8], strides = [1, 1]} : vector<8x32xbf16> to vector<8x8xbf16>
    %145 = vector.extract_strided_slice %125 {offsets = [0, 8], sizes = [8, 8], strides = [1, 1]} : vector<8x32xbf16> to vector<8x8xbf16>
    %cst_71 = arith.constant dense<0.000000e+00> : vector<8x8xf32>
    %146 = tpu.matmul %144, %145, %cst_71 {dimension_numbers = #tpu.dot_dimension_numbers<[1], [1], [0], [0], [0, 0, 1, 0], [], []>} : vector<8x8xbf16>, vector<8x8xbf16>, vector<8x8xf32> -> vector<8x8xf32>
    %cst_72 = arith.constant dense<0xFF800000> : vector<8xf32>
    %147 = vector.multi_reduction <maximumf>, %146, %cst_72 [1] : vector<8x8xf32> to vector<8xf32>
    %148 = vector.shape_cast %147 : vector<8xf32> to vector<8x1xf32>
    %149 = vector.broadcast %148 : vector<8x1xf32> to vector<8x8xf32>
    %150 = arith.subf %146, %149 : vector<8x8xf32>
    %151 = math.exp %150 : vector<8x8xf32>
    %cst_73 = arith.constant dense<0.000000e+00> : vector<8xf32>
    %152 = vector.multi_reduction <add>, %151, %cst_73 [1] : vector<8x8xf32> to vector<8xf32>
    %153 = vector.shape_cast %152 : vector<8xf32> to vector<8x1xf32>
    %154 = tpu.reciprocal %153 {approx = true} : vector<8x1xf32> -> vector<8x1xf32>
    %155 = vector.broadcast %154 : vector<8x1xf32> to vector<8x8xf32>
    %156 = arith.mulf %151, %155 : vector<8x8xf32>
    %157 = arith.truncf %156 : vector<8x8xf32> to vector<8x8xbf16>
    %158 = vector.extract_strided_slice %126 {offsets = [0, 8], sizes = [8, 8], strides = [1, 1]} : vector<8x32xbf16> to vector<8x8xbf16>
    %cst_74 = arith.constant dense<0.000000e+00> : vector<8x8xf32>
    %159 = tpu.matmul %157, %158, %cst_74 {dimension_numbers = #tpu.dot_dimension_numbers<[1], [0], [0], [1], [0, 0, 1, 1], [], []>} : vector<8x8xbf16>, vector<8x8xbf16>, vector<8x8xf32> -> vector<8x8xf32>
    %c0_75 = arith.constant 0 : index
    %c8_76 = arith.constant 8 : index
    %160 = vector.load %arg31[%c0_75, %c8_76] : memref<8x32xf32, #tpu.memory_space<vmem>>, vector<8x8xf32>
    tpu.vector_store %arg31[%c0_75, %c8_76], %159 {strides = array<i32>} : memref<8x32xf32, #tpu.memory_space<vmem>>, vector<8x8xf32>,
    %161 = vector.extract_strided_slice %124 {offsets = [0, 16], sizes = [8, 8], strides = [1, 1]} : vector<8x32xbf16> to vector<8x8xbf16>
    %162 = vector.extract_strided_slice %125 {offsets = [0, 16], sizes = [8, 8], strides = [1, 1]} : vector<8x32xbf16> to vector<8x8xbf16>
    %cst_77 = arith.constant dense<0.000000e+00> : vector<8x8xf32>
    %163 = tpu.matmul %161, %162, %cst_77 {dimension_numbers = #tpu.dot_dimension_numbers<[1], [1], [0], [0], [0, 0, 1, 0], [], []>} : vector<8x8xbf16>, vector<8x8xbf16>, vector<8x8xf32> -> vector<8x8xf32>
    %cst_78 = arith.constant dense<0xFF800000> : vector<8xf32>
    %164 = vector.multi_reduction <maximumf>, %163, %cst_78 [1] : vector<8x8xf32> to vector<8xf32>
    %165 = vector.shape_cast %164 : vector<8xf32> to vector<8x1xf32>
    %166 = vector.broadcast %165 : vector<8x1xf32> to vector<8x8xf32>
    %167 = arith.subf %163, %166 : vector<8x8xf32>
    %168 = math.exp %167 : vector<8x8xf32>
    %cst_79 = arith.constant dense<0.000000e+00> : vector<8xf32>
    %169 = vector.multi_reduction <add>, %168, %cst_79 [1] : vector<8x8xf32> to vector<8xf32>
    %170 = vector.shape_cast %169 : vector<8xf32> to vector<8x1xf32>
    %171 = tpu.reciprocal %170 {approx = true} : vector<8x1xf32> -> vector<8x1xf32>
    %172 = vector.broadcast %171 : vector<8x1xf32> to vector<8x8xf32>
    %173 = arith.mulf %168, %172 : vector<8x8xf32>
    %174 = arith.truncf %173 : vector<8x8xf32> to vector<8x8xbf16>
    %175 = vector.extract_strided_slice %126 {offsets = [0, 16], sizes = [8, 8], strides = [1, 1]} : vector<8x32xbf16> to vector<8x8xbf16>
    %cst_80 = arith.constant dense<0.000000e+00> : vector<8x8xf32>
    %176 = tpu.matmul %174, %175, %cst_80 {dimension_numbers = #tpu.dot_dimension_numbers<[1], [0], [0], [1], [0, 0, 1, 1], [], []>} : vector<8x8xbf16>, vector<8x8xbf16>, vector<8x8xf32> -> vector<8x8xf32>
    %c0_81 = arith.constant 0 : index
    %c16_82 = arith.constant 16 : index
    %177 = vector.load %arg31[%c0_81, %c16_82] : memref<8x32xf32, #tpu.memory_space<vmem>>, vector<8x8xf32>
    tpu.vector_store %arg31[%c0_81, %c16_82], %176 {strides = array<i32>} : memref<8x32xf32, #tpu.memory_space<vmem>>, vector<8x8xf32>,
    %178 = vector.extract_strided_slice %124 {offsets = [0, 24], sizes = [8, 8], strides = [1, 1]} : vector<8x32xbf16> to vector<8x8xbf16>
    %179 = vector.extract_strided_slice %125 {offsets = [0, 24], sizes = [8, 8], strides = [1, 1]} : vector<8x32xbf16> to vector<8x8xbf16>
    %cst_83 = arith.constant dense<0.000000e+00> : vector<8x8xf32>
    %180 = tpu.matmul %178, %179, %cst_83 {dimension_numbers = #tpu.dot_dimension_numbers<[1], [1], [0], [0], [0, 0, 1, 0], [], []>} : vector<8x8xbf16>, vector<8x8xbf16>, vector<8x8xf32> -> vector<8x8xf32>
    %cst_84 = arith.constant dense<0xFF800000> : vector<8xf32>
    %181 = vector.multi_reduction <maximumf>, %180, %cst_84 [1] : vector<8x8xf32> to vector<8xf32>
    %182 = vector.shape_cast %181 : vector<8xf32> to vector<8x1xf32>
    %183 = vector.broadcast %182 : vector<8x1xf32> to vector<8x8xf32>
    %184 = arith.subf %180, %183 : vector<8x8xf32>
    %185 = math.exp %184 : vector<8x8xf32>
    %cst_85 = arith.constant dense<0.000000e+00> : vector<8xf32>
    %186 = vector.multi_reduction <add>, %185, %cst_85 [1] : vector<8x8xf32> to vector<8xf32>
    %187 = vector.shape_cast %186 : vector<8xf32> to vector<8x1xf32>
    %188 = tpu.reciprocal %187 {approx = true} : vector<8x1xf32> -> vector<8x1xf32>
    %189 = vector.broadcast %188 : vector<8x1xf32> to vector<8x8xf32>
    %190 = arith.mulf %185, %189 : vector<8x8xf32>
    %191 = arith.truncf %190 : vector<8x8xf32> to vector<8x8xbf16>
    %192 = vector.extract_strided_slice %126 {offsets = [0, 24], sizes = [8, 8], strides = [1, 1]} : vector<8x32xbf16> to vector<8x8xbf16>
    %cst_86 = arith.constant dense<0.000000e+00> : vector<8x8xf32>
    %193 = tpu.matmul %191, %192, %cst_86 {dimension_numbers = #tpu.dot_dimension_numbers<[1], [0], [0], [1], [0, 0, 1, 1], [], []>} : vector<8x8xbf16>, vector<8x8xbf16>, vector<8x8xf32> -> vector<8x8xf32>
    %c0_87 = arith.constant 0 : index
    %c24_88 = arith.constant 24 : index
    %194 = vector.load %arg31[%c0_87, %c24_88] : memref<8x32xf32, #tpu.memory_space<vmem>>, vector<8x8xf32>
    tpu.vector_store %arg31[%c0_87, %c24_88], %193 {strides = array<i32>} : memref<8x32xf32, #tpu.memory_space<vmem>>, vector<8x8xf32>,
    %c0_89 = arith.constant 0 : index
    %c0_90 = arith.constant 0 : index
    %195 = vector.load %arg31[%c0_89, %c0_90] : memref<8x32xf32, #tpu.memory_space<vmem>>, vector<8x32xf32>
    %196 = arith.truncf %195 : vector<8x32xf32> to vector<8x32xbf16>
    %c0_91 = arith.constant 0 : index
    %c0_92 = arith.constant 0 : index
    %197 = vector.load %arg18[%c0_91, %c0_92] : memref<32x32xbf16, #tpu.memory_space<vmem>>, vector<32x32xbf16>
    %cst_93 = arith.constant dense<0.000000e+00> : vector<8x32xf32>
    %198 = tpu.matmul %196, %197, %cst_93 {dimension_numbers = #tpu.dot_dimension_numbers<[1], [0], [0], [1], [0, 0, 1, 1], [], []>} : vector<8x32xbf16>, vector<32x32xbf16>, vector<8x32xf32> -> vector<8x32xf32>
    %c0_94 = arith.constant 0 : index
    %c0_95 = arith.constant 0 : index
    %199 = vector.load %arg19[%c0_94, %c0_95] : memref<1x32xf32, #tpu.memory_space<vmem>>, vector<1x32xf32>
    %200 = vector.broadcast %199 : vector<1x32xf32> to vector<8x32xf32>
    %201 = arith.addf %198, %200 : vector<8x32xf32>
    %202 = arith.addf %1, %201 : vector<8x32xf32>
    %c0_96 = arith.constant 0 : index
    %c0_97 = arith.constant 0 : index
    %203 = vector.load %arg20[%c0_96, %c0_97] : memref<1x32xf32, #tpu.memory_space<vmem>>, vector<1x32xf32>
    %c0_98 = arith.constant 0 : index
    %c0_99 = arith.constant 0 : index
    %204 = vector.load %arg21[%c0_98, %c0_99] : memref<1x32xf32, #tpu.memory_space<vmem>>, vector<1x32xf32>
    %cst_100 = arith.constant dense<0.000000e+00> : vector<8xf32>
    %205 = vector.multi_reduction <add>, %202, %cst_100 [1] : vector<8x32xf32> to vector<8xf32>
    %206 = vector.shape_cast %205 : vector<8xf32> to vector<8x1xf32>
    %cst_101 = arith.constant 3.200000e+01 : f32
    %207 = vector.broadcast %cst_101 : f32 to vector<8x1xf32>
    %208 = arith.divf %206, %207 : vector<8x1xf32>
    %209 = vector.broadcast %208 : vector<8x1xf32> to vector<8x32xf32>
    %210 = arith.subf %202, %209 : vector<8x32xf32>
    %211 = arith.mulf %210, %210 : vector<8x32xf32>
    %cst_102 = arith.constant dense<0.000000e+00> : vector<8xf32>
    %212 = vector.multi_reduction <add>, %211, %cst_102 [1] : vector<8x32xf32> to vector<8xf32>
    %213 = vector.shape_cast %212 : vector<8xf32> to vector<8x1xf32>
    %cst_103 = arith.constant 3.200000e+01 : f32
    %214 = vector.broadcast %cst_103 : f32 to vector<8x1xf32>
    %215 = arith.divf %213, %214 : vector<8x1xf32>
    %216 = vector.broadcast %208 : vector<8x1xf32> to vector<8x32xf32>
    %217 = arith.subf %202, %216 : vector<8x32xf32>
    %cst_104 = arith.constant 9.99999974E-6 : f32
    %218 = vector.broadcast %cst_104 : f32 to vector<8x1xf32>
    %219 = arith.addf %215, %218 : vector<8x1xf32>
    %220 = math.rsqrt %219 : vector<8x1xf32>
    %221 = vector.broadcast %220 : vector<8x1xf32> to vector<8x32xf32>
    %222 = arith.mulf %217, %221 : vector<8x32xf32>
    %223 = vector.broadcast %203 : vector<1x32xf32> to vector<8x32xf32>
    %224 = arith.mulf %222, %223 : vector<8x32xf32>
    %225 = vector.broadcast %204 : vector<1x32xf32> to vector<8x32xf32>
    %226 = arith.addf %224, %225 : vector<8x32xf32>
    %227 = arith.truncf %226 : vector<8x32xf32> to vector<8x32xbf16>
    %c0_105 = arith.constant 0 : index
    %c0_106 = arith.constant 0 : index
    %228 = vector.load %arg22[%c0_105, %c0_106] : memref<32x128xbf16, #tpu.memory_space<vmem>>, vector<32x128xbf16>
    %cst_107 = arith.constant dense<0.000000e+00> : vector<8x128xf32>
    %229 = tpu.matmul %227, %228, %cst_107 {dimension_numbers = #tpu.dot_dimension_numbers<[1], [0], [0], [1], [0, 0, 1, 1], [], []>} : vector<8x32xbf16>, vector<32x128xbf16>, vector<8x128xf32> -> vector<8x128xf32>
    %c0_108 = arith.constant 0 : index
    %c0_109 = arith.constant 0 : index
    %230 = vector.load %arg23[%c0_108, %c0_109] : memref<1x128xf32, #tpu.memory_space<vmem>>, vector<1x128xf32>
    %231 = vector.broadcast %230 : vector<1x128xf32> to vector<8x128xf32>
    %232 = arith.addf %229, %231 : vector<8x128xf32>
    %cst_110 = arith.constant 0.000000e+00 : f32
    %233 = vector.broadcast %cst_110 : f32 to vector<8x128xf32>
    %234 = arith.maximumf %232, %233 : vector<8x128xf32>
    %235 = arith.truncf %234 : vector<8x128xf32> to vector<8x128xbf16>
    %c0_111 = arith.constant 0 : index
    %c0_112 = arith.constant 0 : index
    %236 = vector.load %arg24[%c0_111, %c0_112] : memref<128x32xbf16, #tpu.memory_space<vmem>>, vector<128x32xbf16>
    %cst_113 = arith.constant dense<0.000000e+00> : vector<8x32xf32>
    %237 = tpu.matmul %235, %236, %cst_113 {dimension_numbers = #tpu.dot_dimension_numbers<[1], [0], [0], [1], [0, 0, 1, 1], [], []>} : vector<8x128xbf16>, vector<128x32xbf16>, vector<8x32xf32> -> vector<8x32xf32>
    %c0_114 = arith.constant 0 : index
    %c0_115 = arith.constant 0 : index
    %238 = vector.load %arg25[%c0_114, %c0_115] : memref<1x32xf32, #tpu.memory_space<vmem>>, vector<1x32xf32>
    %239 = vector.broadcast %238 : vector<1x32xf32> to vector<8x32xf32>
    %240 = arith.addf %237, %239 : vector<8x32xf32>
    %241 = arith.addf %226, %240 : vector<8x32xf32>
    %c0_116 = arith.constant 0 : index
    %c0_117 = arith.constant 0 : index
    %242 = vector.load %arg26[%c0_116, %c0_117] : memref<1x32xf32, #tpu.memory_space<vmem>>, vector<1x32xf32>
    %c0_118 = arith.constant 0 : index
    %c0_119 = arith.constant 0 : index
    %243 = vector.load %arg27[%c0_118, %c0_119] : memref<1x32xf32, #tpu.memory_space<vmem>>, vector<1x32xf32>
    %cst_120 = arith.constant dense<0.000000e+00> : vector<8xf32>
    %244 = vector.multi_reduction <add>, %241, %cst_120 [1] : vector<8x32xf32> to vector<8xf32>
    %245 = vector.shape_cast %244 : vector<8xf32> to vector<8x1xf32>
    %cst_121 = arith.constant 3.200000e+01 : f32
    %246 = vector.broadcast %cst_121 : f32 to vector<8x1xf32>
    %247 = arith.divf %245, %246 : vector<8x1xf32>
    %248 = vector.broadcast %247 : vector<8x1xf32> to vector<8x32xf32>
    %249 = arith.subf %241, %248 : vector<8x32xf32>
    %250 = arith.mulf %249, %249 : vector<8x32xf32>
    %cst_122 = arith.constant dense<0.000000e+00> : vector<8xf32>
    %251 = vector.multi_reduction <add>, %250, %cst_122 [1] : vector<8x32xf32> to vector<8xf32>
    %252 = vector.shape_cast %251 : vector<8xf32> to vector<8x1xf32>
    %cst_123 = arith.constant 3.200000e+01 : f32
    %253 = vector.broadcast %cst_123 : f32 to vector<8x1xf32>
    %254 = arith.divf %252, %253 : vector<8x1xf32>
    %255 = vector.broadcast %247 : vector<8x1xf32> to vector<8x32xf32>
    %256 = arith.subf %241, %255 : vector<8x32xf32>
    %cst_124 = arith.constant 9.99999974E-6 : f32
    %257 = vector.broadcast %cst_124 : f32 to vector<8x1xf32>
    %258 = arith.addf %254, %257 : vector<8x1xf32>
    %259 = math.rsqrt %258 : vector<8x1xf32>
    %260 = vector.broadcast %259 : vector<8x1xf32> to vector<8x32xf32>
    %261 = arith.mulf %256, %260 : vector<8x32xf32>
    %262 = vector.broadcast %242 : vector<1x32xf32> to vector<8x32xf32>
    %263 = arith.mulf %261, %262 : vector<8x32xf32>
    %264 = vector.broadcast %243 : vector<1x32xf32> to vector<8x32xf32>
    %265 = arith.addf %263, %264 : vector<8x32xf32>
    %266 = arith.truncf %265 : vector<8x32xf32> to vector<8x32xbf16>
    %c0_125 = arith.constant 0 : index
    %c0_126 = arith.constant 0 : index
    %267 = vector.load %arg28[%c0_125, %c0_126] : memref<32x128xbf16, #tpu.memory_space<vmem>>, vector<32x128xbf16>
    %cst_127 = arith.constant dense<0.000000e+00> : vector<8x128xf32>
    %268 = tpu.matmul %266, %267, %cst_127 {dimension_numbers = #tpu.dot_dimension_numbers<[1], [0], [0], [1], [0, 0, 1, 1], [], []>} : vector<8x32xbf16>, vector<32x128xbf16>, vector<8x128xf32> -> vector<8x128xf32>
    %c0_128 = arith.constant 0 : index
    %c0_129 = arith.constant 0 : index
    %269 = vector.load %arg29[%c0_128, %c0_129] : memref<1x128xf32, #tpu.memory_space<vmem>>, vector<1x128xf32>
    %270 = vector.broadcast %269 : vector<1x128xf32> to vector<8x128xf32>
    %271 = arith.addf %268, %270 : vector<8x128xf32>
    %c0_130 = arith.constant 0 : index
    %c0_131 = arith.constant 0 : index
    %c0_132 = arith.constant 0 : index
    %272 = vector.load %arg30[%c0_130, %c0_131, %c0_132] : memref<1x8x128xf32, #tpu.memory_space<vmem>>, vector<1x8x128xf32>
    %273 = vector.shape_cast %272 : vector<1x8x128xf32> to vector<8x128xf32>
    %274 = vector.shape_cast %271 : vector<8x128xf32> to vector<1x8x128xf32>
    tpu.vector_store %arg30[%c0_130, %c0_131, %c0_132], %274 {strides = array<i32>} : memref<1x8x128xf32, #tpu.memory_space<vmem>>, vector<1x8x128xf32>,
    return
  }
  func.func @transform_0(%arg0: i32) -> (i32, i32, i32) {
    %c0_i32 = arith.constant 0 : i32
    %c0_i32_0 = arith.constant 0 : i32
    %c0_i32_1 = arith.constant 0 : i32
    return %arg0, %c0_i32, %c0_i32_0 : i32, i32, i32
  }
  func.func @transform_1(%arg0: i32) -> (i32, i32) {
    %c0_i32 = arith.constant 0 : i32
    %c0_i32_0 = arith.constant 0 : i32
    %c0_i32_1 = arith.constant 0 : i32
    return %c0_i32, %c0_i32_0 : i32, i32
  }
  func.func @transform_2(%arg0: i32) -> (i32, i32) {
    %c0_i32 = arith.constant 0 : i32
    %c0_i32_0 = arith.constant 0 : i32
    %c0_i32_1 = arith.constant 0 : i32
    return %c0_i32, %c0_i32_0 : i32, i32
  }
  func.func @transform_3(%arg0: i32) -> (i32, i32) {
    %c0_i32 = arith.constant 0 : i32
    %c0_i32_0 = arith.constant 0 : i32
    %c0_i32_1 = arith.constant 0 : i32
    return %c0_i32, %c0_i32_0 : i32, i32
  }
  func.func @transform_4(%arg0: i32) -> (i32, i32) {
    %c0_i32 = arith.constant 0 : i32
    %c0_i32_0 = arith.constant 0 : i32
    %c0_i32_1 = arith.constant 0 : i32
    return %c0_i32, %c0_i32_0 : i32, i32
  }
  func.func @transform_5(%arg0: i32) -> (i32, i32) {
    %c0_i32 = arith.constant 0 : i32
    %c0_i32_0 = arith.constant 0 : i32
    %c0_i32_1 = arith.constant 0 : i32
    return %c0_i32, %c0_i32_0 : i32, i32
  }
  func.func @transform_6(%arg0: i32) -> (i32, i32) {
    %c0_i32 = arith.constant 0 : i32
    %c0_i32_0 = arith.constant 0 : i32
    %c0_i32_1 = arith.constant 0 : i32
    return %c0_i32, %c0_i32_0 : i32, i32
  }
  func.func @transform_7(%arg0: i32) -> (i32, i32) {
    %c0_i32 = arith.constant 0 : i32
    %c0_i32_0 = arith.constant 0 : i32
    %c0_i32_1 = arith.constant 0 : i32
    return %c0_i32, %c0_i32_0 : i32, i32
  }
  func.func @transform_8(%arg0: i32) -> (i32, i32) {
    %c0_i32 = arith.constant 0 : i32
    %c0_i32_0 = arith.constant 0 : i32
    %c0_i32_1 = arith.constant 0 : i32
    return %c0_i32, %c0_i32_0 : i32, i32
  }
  func.func @transform_9(%arg0: i32) -> (i32, i32) {
    %c0_i32 = arith.constant 0 : i32
    %c0_i32_0 = arith.constant 0 : i32
    %c0_i32_1 = arith.constant 0 : i32
    return %c0_i32, %c0_i32_0 : i32, i32
  }
  func.func @transform_10(%arg0: i32) -> (i32, i32) {
    %c0_i32 = arith.constant 0 : i32
    %c0_i32_0 = arith.constant 0 : i32
    %c0_i32_1 = arith.constant 0 : i32
    return %c0_i32, %c0_i32_0 : i32, i32
  }
  func.func @transform_11(%arg0: i32) -> (i32, i32) {
    %c0_i32 = arith.constant 0 : i32
    %c0_i32_0 = arith.constant 0 : i32
    %c0_i32_1 = arith.constant 0 : i32
    return %c0_i32, %c0_i32_0 : i32, i32
  }
  func.func @transform_12(%arg0: i32) -> (i32, i32) {
    %c0_i32 = arith.constant 0 : i32
    %c0_i32_0 = arith.constant 0 : i32
    %c0_i32_1 = arith.constant 0 : i32
    return %c0_i32, %c0_i32_0 : i32, i32
  }
  func.func @transform_13(%arg0: i32) -> (i32, i32) {
    %c0_i32 = arith.constant 0 : i32
    %c0_i32_0 = arith.constant 0 : i32
    %c0_i32_1 = arith.constant 0 : i32
    return %c0_i32, %c0_i32_0 : i32, i32
  }
  func.func @transform_14(%arg0: i32) -> (i32, i32) {
    %c0_i32 = arith.constant 0 : i32
    %c0_i32_0 = arith.constant 0 : i32
    %c0_i32_1 = arith.constant 0 : i32
    return %c0_i32, %c0_i32_0 : i32, i32
  }
  func.func @transform_15(%arg0: i32) -> (i32, i32) {
    %c0_i32 = arith.constant 0 : i32
    %c0_i32_0 = arith.constant 0 : i32
    %c0_i32_1 = arith.constant 0 : i32
    return %c0_i32, %c0_i32_0 : i32, i32
  }
  func.func @transform_16(%arg0: i32) -> (i32, i32) {
    %c0_i32 = arith.constant 0 : i32
    %c0_i32_0 = arith.constant 0 : i32
    %c0_i32_1 = arith.constant 0 : i32
    return %c0_i32, %c0_i32_0 : i32, i32
  }
  func.func @transform_17(%arg0: i32) -> (i32, i32) {
    %c0_i32 = arith.constant 0 : i32
    %c0_i32_0 = arith.constant 0 : i32
    %c0_i32_1 = arith.constant 0 : i32
    return %c0_i32, %c0_i32_0 : i32, i32
  }
  func.func @transform_18(%arg0: i32) -> (i32, i32) {
    %c0_i32 = arith.constant 0 : i32
    %c0_i32_0 = arith.constant 0 : i32
    %c0_i32_1 = arith.constant 0 : i32
    return %c0_i32, %c0_i32_0 : i32, i32
  }
  func.func @transform_19(%arg0: i32) -> (i32, i32) {
    %c0_i32 = arith.constant 0 : i32
    %c0_i32_0 = arith.constant 0 : i32
    %c0_i32_1 = arith.constant 0 : i32
    return %c0_i32, %c0_i32_0 : i32, i32
  }
  func.func @transform_20(%arg0: i32) -> (i32, i32) {
    %c0_i32 = arith.constant 0 : i32
    %c0_i32_0 = arith.constant 0 : i32
    %c0_i32_1 = arith.constant 0 : i32
    return %c0_i32, %c0_i32_0 : i32, i32
  }
  func.func @transform_21(%arg0: i32) -> (i32, i32) {
    %c0_i32 = arith.constant 0 : i32
    %c0_i32_0 = arith.constant 0 : i32
    %c0_i32_1 = arith.constant 0 : i32
    return %c0_i32, %c0_i32_0 : i32, i32
  }
  func.func @transform_22(%arg0: i32) -> (i32, i32) {
    %c0_i32 = arith.constant 0 : i32
    %c0_i32_0 = arith.constant 0 : i32
    %c0_i32_1 = arith.constant 0 : i32
    return %c0_i32, %c0_i32_0 : i32, i32
  }
  func.func @transform_23(%arg0: i32) -> (i32, i32) {
    %c0_i32 = arith.constant 0 : i32
    %c0_i32_0 = arith.constant 0 : i32
    %c0_i32_1 = arith.constant 0 : i32
    return %c0_i32, %c0_i32_0 : i32, i32
  }
  func.func @transform_24(%arg0: i32) -> (i32, i32) {
    %c0_i32 = arith.constant 0 : i32
    %c0_i32_0 = arith.constant 0 : i32
    %c0_i32_1 = arith.constant 0 : i32
    return %c0_i32, %c0_i32_0 : i32, i32
  }
  func.func @transform_25(%arg0: i32) -> (i32, i32) {
    %c0_i32 = arith.constant 0 : i32
    %c0_i32_0 = arith.constant 0 : i32
    %c0_i32_1 = arith.constant 0 : i32
    return %c0_i32, %c0_i32_0 : i32, i32
  }
  func.func @transform_26(%arg0: i32) -> (i32, i32) {
    %c0_i32 = arith.constant 0 : i32
    %c0_i32_0 = arith.constant 0 : i32
    %c0_i32_1 = arith.constant 0 : i32
    return %c0_i32, %c0_i32_0 : i32, i32
  }
  func.func @transform_27(%arg0: i32) -> (i32, i32) {
    %c0_i32 = arith.constant 0 : i32
    %c0_i32_0 = arith.constant 0 : i32
    %c0_i32_1 = arith.constant 0 : i32
    return %c0_i32, %c0_i32_0 : i32, i32
  }
  func.func @transform_28(%arg0: i32) -> (i32, i32) {
    %c0_i32 = arith.constant 0 : i32
    %c0_i32_0 = arith.constant 0 : i32
    %c0_i32_1 = arith.constant 0 : i32
    return %c0_i32, %c0_i32_0 : i32, i32
  }
  func.func @transform_29(%arg0: i32) -> (i32, i32, i32) {
    %c0_i32 = arith.constant 0 : i32
    %c0_i32_0 = arith.constant 0 : i32
    %c0_i32_1 = arith.constant 0 : i32
    return %arg0, %c0_i32, %c0_i32_0 : i32, i32, i32
  }
}

</mosaic_0001>

<bundles_post_ra>
// kernel: single_layer_transformer.1
= control target key start
LH: loop header
LB: loop body
LE: loop exit
PB: predicated region body
PF: predicated region fallthrough
CT: control target
= control target key end

     0   :  { %s2395_s6 = smov 1   ;;  %s2396_s10 = smov 2   ;;  %s2820_s0 = inlined_call_operand.smem [shape: u32[30], index: -1, kind: input, shape index: {}] }
   0x1   :  { %s2441_s5 = sld [smem:[%s2820_s0]]   ;;  %s2397_s14 = smov 3  }
   0x2   :  { %s2446_s9 = sld [smem:[%s2820_s0 + %s2395_s6]]   ;;  %s2398_s18 = smov 4  }
   0x3   :  { %s2451_s13 = sld [smem:[%s2820_s0 + %s2396_s10]]   ;;  %s2399_s22 = smov 5  }
   0x4   :  { %s2456_s17 = sld [smem:[%s2820_s0 + %s2397_s14]]   ;;  %s2400_s26 = smov 6  }
   0x5   :  { %s2461_s21 = sld [smem:[%s2820_s0 + %s2398_s18]]   ;;  %s2401_s30 = smov 7  }
   0x6   :  { %s2466_s25 = sld [smem:[%s2820_s0 + %s2399_s22]]   ;;  %s2402_s4 = smov 8  }
   0x7   :  { %2834 = sst [smem:[#allocation6_spill]] %s2441_s5  ;;  %s2403_s10 = smov 9  }
   0x8   :  { %2835 = sst [smem:[#allocation7_spill]] %s2446_s9  ;;  %s2404_s15 = smov 10  }
   0x9   :  { %2836 = sst [smem:[#allocation8_spill]] %s2451_s13  ;;  %s2405_s20 = smov 11  }
   0xa   :  { %s2471_s29 = sld [smem:[%s2820_s0 + %s2400_s26]]   ;;  %s2406_s26 = smov 12  }
   0xb   :  { %s2476_s3 = sld [smem:[%s2820_s0 + %s2401_s30]]   ;;  %s2407_s1 = smov 13  }
   0xc   :  { %s2481_s8 = sld [smem:[%s2820_s0 + %s2402_s4]]   ;;  %s2408_s7 = smov 14  }
   0xd   :  { %s2486_s14 = sld [smem:[%s2820_s0 + %s2403_s10]]   ;;  %s2410_s22 = smov 16  }
   0xe   :  { %s2491_s19 = sld [smem:[%s2820_s0 + %s2404_s15]]   ;;  %s2409_s15 = smov 15  }
   0xf   :  { %s2496_s24 = sld [smem:[%s2820_s0 + %s2405_s20]]   ;;  %s2411_s28 = smov 17  }
  0x10   :  { %s2501_s30 = sld [smem:[%s2820_s0 + %s2406_s26]]  }
  0x11   :  { %2837 = sst [smem:[#allocation9_spill]] %s2476_s3 }
  0x12   :  { %2838 = sst [smem:[#allocation10_spill]] %s2481_s8 }
  0x13   :  { %2839 = sst [smem:[#allocation11_spill]] %s2486_s14 }
  0x14   :  { %s2506_s6 = sld [smem:[%s2820_s0 + %s2407_s1]]  }
  0x15   :  { %s2511_s12 = sld [smem:[%s2820_s0 + %s2408_s7]]   ;;  %s2412_s7 = smov 18  }
  0x16   :  { %s2516_s20 = sld [smem:[%s2820_s0 + %s2409_s15]]   ;;  %s2413_s15 = smov 19  }
  0x17   :  { %s2521_s27 = sld [smem:[%s2820_s0 + %s2410_s22]]   ;;  %s2414_s22 = smov 20  }
  0x18   :  { %s2526_s4 = sld [smem:[%s2820_s0 + %s2411_s28]]   ;;  %s2415_s28 = smov 21  }
  0x1a   :  { %2840 = sst [smem:[#allocation12_spill]] %s2506_s6 }
  0x1b   :  { %2841 = sst [smem:[#allocation13_spill]] %s2511_s12 }
  0x1c   :  { %2842 = sst [smem:[#allocation14_spill]] %s2516_s20 }
  0x1d   :  { %2843 = sst [smem:[#allocation15_spill]] %s2521_s27 }
  0x1e   :  { %2844 = sst [smem:[#allocation16_spill]] %s2526_s4 }
  0x1f   :  { %s2531_s12 = sld [smem:[%s2820_s0 + %s2412_s7]]   ;;  %s2416_s7 = smov 22  }
  0x20   :  { %s2536_s20 = sld [smem:[%s2820_s0 + %s2413_s15]]   ;;  %s2417_s15 = smov 23  }
  0x21   :  { %s2541_s27 = sld [smem:[%s2820_s0 + %s2414_s22]]   ;;  %s2418_s22 = smov 24  }
  0x22   :  { %s2546_s4 = sld [smem:[%s2820_s0 + %s2415_s28]]   ;;  %s2419_s28 = smov 25  }
  0x25   :  { %2845 = sst [smem:[#allocation17_spill]] %s2531_s12 }
  0x26   :  { %2846 = sst [smem:[#allocation18_spill]] %s2536_s20 }
  0x27   :  { %2847 = sst [smem:[#allocation19_spill]] %s2541_s27 }
  0x28   :  { %2848 = sst [smem:[#allocation20_spill]] %s2546_s4 }
  0x29   :  { %s2551_s12 = sld [smem:[%s2820_s0 + %s2416_s7]]   ;;  %s2420_s7 = smov 26  }
  0x2a   :  { %s2556_s20 = sld [smem:[%s2820_s0 + %s2417_s15]]   ;;  %s2421_s15 = smov 27  }
  0x2b   :  { %s2561_s27 = sld [smem:[%s2820_s0 + %s2418_s22]]   ;;  %s2422_s22 = smov 28  }
  0x2c   :  { %s2566_s4 = sld [smem:[%s2820_s0 + %s2419_s28]]   ;;  %s2423_s28 = smov 29  }
  0x2f   :  { %2849 = sst [smem:[#allocation21_spill]] %s2551_s12 }
  0x30   :  { %2850 = sst [smem:[#allocation22_spill]] %s2556_s20 }
  0x31   :  { %2851 = sst [smem:[#allocation23_spill]] %s2561_s27 }
  0x32   :  { %2852 = sst [smem:[#allocation24_spill]] %s2566_s4 }
  0x33   :  { %s2571_s12 = sld [smem:[%s2820_s0 + %s2420_s7]]  }
  0x34   :  { %s2576_s20 = sld [smem:[%s2820_s0 + %s2421_s15]]  }
  0x35   :  { %s2581_s27 = sld [smem:[%s2820_s0 + %s2422_s22]]  }
  0x36   :  { %s2586_s4 = sld [smem:[%s2820_s0 + %s2423_s28]]  }
  0x39   :  { %2853 = sst [smem:[#allocation25_spill]] %s2571_s12 }
  0x3a   :  { %64 = vsyncpa [#allocation4], 0 }
  0x3b   :  { %66 = vsyncpa [#allocation4 + $0x1], 0  ;;  %s2588_s7 = smov 0   ;;  %s2590_s10 = smov 0  }
  0x3c   :  { %s2592_s11 = smov 0   ;;  %s2594_s15 = smov 0  }
  0x3d LB: > { %s2854_s14 = sld [smem:[#allocation11_spill]]  ;;  %s2609_s0 = sadd.s32 4294967295, %s2393_s15   ;;  %s2385_s10 = sphi %s2590_s10, %s2882_s10   ;;  %s2381_s7 = sphi %s2588_s7, %s2881_s7   ;;  %s2393_s15 = sphi %s2594_s15, %s2884_s15   ;;  %s2389_s11 = sphi %s2592_s11, %s2883_s11  }
  0x3e   : > { %s2855_s6 = sld [smem:[#allocation12_spill]]  ;;  %s2023_s16 = sadd.s32 4294967294, %s2393_s15  }
  0x3f   : > { %s2613_s18 = sadd.s32 1, %s2393_s15   ;;  %s693_s22 = sadd.s32 1, %s2389_s11 }
  0x40   : > { %s690_s23 = ssub.s32 %s2393_s15, %s2613_s18  ;;  %p703_p0 = scmp.ne.s32.totalorder %s2389_s11, %s2385_s10 }
  0x41   : > { %p691_p1 = scmp.eq.s32.totalorder %s690_s23, 0  ;;  %p704_p2 = scmp.eq.s32.totalorder %s2609_s0, 1 }
  0x42   : > { %p709_p3 = scmp.ne.s32.totalorder %s2385_s10, %s2381_s7  ;;  %p710_p4 = scmp.eq.s32.totalorder %s2023_s16, 1 }
  0x43   : > { %s2624_s26 = scalar_select %p691_p1, %s2389_s11, %s693_s22  }
  0x44   : > { %p2626_p5 = por %p704_p2, %p703_p0  ;;  %p2630_p6 = por %p710_p4, %p709_p3 }
  0x45   : > { %p2026_p7 = scmp.ge.s32.totalorder %s2393_s15, 1  ;;  %p819_p8 = scmp.lt.s32.totalorder %s2393_s15, 3 }
  0x47   : > { %p820_p9 = pnand %p2026_p7, %p819_p8 }
  0x48   : > { %s2858_s5 = sld [smem:[#allocation6_spill]] (!%p820_p9)  ;;  %p894_p10 = scmp.lt.s32.totalorder (!%p820_p9), %s2609_s0, 1 }
  0x49   : > { %823 = sbr.rel (%p820_p9) target bundleno = 3159 (0xc57), region = 136  ;;  %s2859_s3 = sld [smem:[#allocation9_spill]] (!%p820_p9) }
  0x4a   : > { %s2860_s9 = sld [smem:[#allocation7_spill]] (!%p820_p9)  ;;  %s2425_s23 = smov (!%p820_p9), 112  }
  0x4b   : > { %s2861_s13 = sld [smem:[#allocation8_spill]] (!%p820_p9) }
  0x4c   : > { %s2862_s8 = sld [smem:[#allocation10_spill]] (!%p820_p9) }
  0x4d   : > { %s2880_s12 = sld [smem:[#allocation25_spill]] (!%p820_p9) }
  0x4e   : > { %v2174_v0 = vld [vmem:[%s2461_s21 + $0x8] sm:$0xff]  ;;  %v2173_v2 = vld [vmem:[%s2461_s21] sm:$0xff]  ;;  %s895_s2 = scalar_select %p894_p10, %s2609_s0, 1  ;;  %vm929_vm0 = vcmask 261120   ;;  %v2424_v6 = vmov 0   ;;  %vm1015_vm1 = vcmask 64512  }
  0x4f   : > { %v2172_v1 = vld [vmem:[%s2456_s17 + $0x8] sm:$0xff]  ;;  %972 = vmatpush.bf16.msra.mxu3 %v2174_v0  ;;  %v2171_v3 = vld [vmem:[%s2456_s17] sm:$0xff]  ;;  %2276 = vset.pattern.permute.xlu0 %v2424_v6  ;;  %v2428_v34 = vmov -1e+09   ;;  %vm1050_vm3 = vcmask 1043456   ;;  %vm1137_vm4 = vcmask 130112  }
  0x50   : > { %939 = vmatpush.bf16.msra.mxu0 %v2172_v1  ;;  %s2028_s16 = sshll.u32 %s895_s2, 3  ;;  %v2277_v7 = vld [vmem:[%s2471_s29] ss:$0 sm:$0xff]  ;;  %s2826_s2 = smov 120   ;;  %v2176_v23 = vld [vmem:[%s2466_s25 + $0x8] sm:$0xff]  ;;  %vm1199_vm5 = vcmask 195712  }
  0x51   : > { %s897_s22 = scalar_lea.vmem %s2858_s5, %s2028_s16  ;;  %v2278_v11 = vld [vmem:[%s2859_s3] ss:$0 sm:$0xff]  ;;  %s2824_s16 = smov 104   ;;  %1005 = vmatpush.bf16.msra.mxu2 %v2176_v23  ;;  %vm1261_vm6 = vcmask 261312  }
  0x52   : > { %v2643_v4 = vld [vmem:[%s897_s22] sm:$0xff]  ;;  %s2830_s22 = smov 8   ;;  %s2872_s3 = sld [smem:[#allocation17_spill]] }
  0x53   : > { %973 = vmatpush.bf16.msra.mxu3 %v2173_v2  ;;  %v2647_v5 = vpack.c.bf16 %v2643_v4, %v2643_v4  ;;  %v901_v22 = vld [vmem:[%s2860_s9] sm:$0xff]  ;;  %s2877_s5 = sld [smem:[#allocation21_spill]] }
  0x54   : > { %940 = vmatpush.bf16.msra.mxu0 %v2171_v3  ;;  %v2279_v32 = vld [vmem:[%s2861_s13] ss:$0 sm:$0xff] }
  0x55   : > { %v2175_v41 = vld [vmem:[%s2466_s25] sm:$0xff] }
  0x56   : > { %2046 = vmatmul.msk.bf16.vlgmr.msra.gmra.mxu3 %vm929_vm0, %v2647_v5  ;;  %1006 = vmatpush.bf16.msra.mxu2 %v2175_v41  ;;  %v2280_v59 = vld [vmem:[%s2862_s8] ss:$0 sm:$0xff] }
  0x57   : > { %2037 = vmatmul.msk.bf16.vlgmr.msra.gmra.mxu0 %vm929_vm0, %v2647_v5 }
  0x59   : > { %2055 = vmatmul.msk.bf16.vlgmr.msra.gmra.mxu2 %vm929_vm0, %v2647_v5 }
  0xd4   : > { %v942_v8 = vpop.f32.mrf.mxu0 }
  0xd5   : > { %v943_v9 = vadd.f32 %v2277_v7, %v942_v8 }
  0xd7   : > { %v1012_v10 = vpack.c.bf16 %v943_v9, %v943_v9 }
  0xd9   : > { %v1069_v12 = vunpack.c.l.b16 %v1012_v10  ;;  %v975_v13 = vpop.f32.mrf.mxu3 }
  0xda   : > { %v976_v15 = vadd.f32 %v2278_v11, %v975_v13 }
  0xdb   : > { %v1070_v14 = vpack.c.b16 %v1069_v12, %v1069_v12 }
  0xdc   : > { %v944_v16 = vpop.f32.mrf.mxu0  ;;  %v1013_v17 = vpack.c.bf16 %v976_v15, %v976_v15  ;;  %v1008_v60 = vpop.f32.mrf.mxu2 }
  0xdd   : > { %1139 = vrot.lane.b32.xlu2 %v1070_v14, %s2425_s23  ;;  %v1009_v61 = vadd.f32 %v2280_v59, %v1008_v60  ;;  %v2179_v59 = vld [vmem:[%s2496_s24] sm:$0xff] }
  0xde   : > { %v1074_v18 = vunpack.c.l.b16 %v1013_v17  ;;  %v1020_v19 = vsel %vm1015_vm1, %v1013_v17, 0  ;;  %v2181_v60 = vld [vmem:[%s2501_s30] sm:$0xff] }
  0xdf   : > { %1029 = vmatpush.bf16.xpose.msrb.mxu3 %v1020_v19  ;;  %v1014_v62 = vpack.c.bf16 %v1009_v61, %v1009_v61  ;;  %v2183_v61 = vld [vmem:[%s2855_s6] sm:$0xff] }
  0xe0   : > { %v1075_v20 = vpack.c.b16 %v1074_v18, %v1074_v18 }
  0xe1   : > { %v977_v21 = vpop.f32.mrf.mxu3  ;;  %v1052_v63 = vsel %vm1050_vm3, %v1014_v62, 0 }
  0xe2   : > { %1141 = vrot.lane.b32.xlu1 %v1075_v20, %s2425_s23  ;;  %1076 = vrot.lane.b32.xlu0 %v1075_v20, %s2826_s2  ;;  %v1110_v21 = vunpack.c.l.b16 %v1014_v62  ;;  %v2281_v62 = vld [vmem:[%s2491_s19] ss:$0 sm:$0xff] }
  0xe3   : > { %1061 = vmatpush.bf16.msrb.mxu0 %v1052_v63 }
  0xe4   : > { %v1010_v0 = vpop.f32.mrf.mxu2 }
  0xe5   : > { %1201 = vrot.lane.b32.xlu2 %v1070_v14, %s2824_s16 }
  0xe6   : > { %2056 = vmatmul.msk.bf16.vlgmr.msrb.gmra.mxu3 %vm1015_vm1, %v1012_v10 }
  0xea   : > { %1203 = vrot.lane.b32.xlu1 %v1075_v20, %s2824_s16  ;;  %1071 = vrot.lane.b32.xlu0 %v1070_v14, %s2826_s2 }
  0xf2   : > { %904 = vperm.xlu0 %2276, %v901_v22   ;;  %v1111_v22 = vpack.c.b16 %v1110_v21, %v1110_v21 }
 0x137   : > { %v1140_v28 = vpop.permute.xlu2 %1139 }
 0x13f   : > { %v1202_v38 = vpop.permute.xlu2 %1201 }
 0x154   : > { %v1142_v24 = vpop.permute.xlu1 %1141  ;;  %v1077_v25 = vpop.permute.xlu0 %1076 }
 0x155   : > { %v1147_v26 = vsel %vm1015_vm1, %v1142_v24, 0  ;;  %v1082_v27 = vsel %vm1015_vm1, %v1077_v25, 0 }
 0x156   : > { %1091 = vmatpush.bf16.xpose.msra.mxu1 %v1082_v27  ;;  %1156 = vmatpush.bf16.xpose.msra.mxu3 %v1147_v26 }
 0x15c   : > { %v1204_v29 = vpop.permute.xlu1 %1203  ;;  %v1072_v30 = vpop.permute.xlu0 %1071 }
 0x15d   : > { %2058 = vmatmul.msk.bf16.vlgmr.msra.gmra.mxu1 %vm1015_vm1, %v1072_v30  ;;  %2060 = vmatmul.msk.bf16.vlgmr.msra.gmra.mxu3 %vm1015_vm1, %v1140_v28  ;;  %v1209_v31 = vsel %vm1015_vm1, %v1204_v29, 0 }
 0x15e   : > { %1218 = vmatpush.bf16.xpose.msrb.mxu1 %v1209_v31 }
 0x164   : > { %v905_v33 = vpop.permute.xlu0 %904 }
 0x165   : > { %vm907_vm2 = vcmp.eq.s32.totalorder %v905_v33, %v2279_v32 }
 0x166   : > { %v908_v35 = vsel %vm907_vm2, 0.0, %v2428_v34 }
 0x169   : > { %v1031_v36 = vpop.f32.mrf.mxu3 }
 0x16a   : > { %v1032_v37 = vadd.f32 %v1031_v36, %v908_v35 }
 0x16c   : > { %v1035_v39 = vsel %vm1015_vm1, %v1032_v37, -inf }
 0x16d   : > { %2062 = vmatmul.msk.bf16.vlgmr.msrb.gmra.mxu1 %vm1015_vm1, %v1202_v38  ;;  %1036 = vmax.xlane.f32.xlu2 %v1035_v39 }
 0x171   : > { %v1033_v40 = vpop.f32.mrf.mxu3 }
 0x1da   : > { %v1093_v42 = vpop.f32.mrf.mxu1 }
 0x1db   : > { %v1094_v43 = vadd.f32 %v1093_v42, %v908_v35 }
 0x1dd   : > { %v1097_v44 = vsel %vm1015_vm1, %v1094_v43, -inf }
 0x1de   : > { %1098 = vmax.xlane.f32.xlu1 %v1097_v44 }
 0x1e0   : > { %v1158_v45 = vpop.f32.mrf.mxu3  ;;  %v1037_v46 = vpop.xlane.xlu2 %1036 }
 0x1e1   : > { %v1159_v47 = vadd.f32 %v1158_v45, %v908_v35  ;;  %v1038_v48 = vsub.f32 %v1032_v37, %v1037_v46 }
 0x1e2   : > { %v1095_v49 = vpop.f32.mrf.mxu1 }
 0x1e3   : > { %v1039_v50 = vmul.f32 1.442695, %v1038_v48  ;;  %v1162_v51 = vsel %vm1015_vm1, %v1159_v47, -inf  ;;  %v2178_v49 = vld [vmem:[%s2854_s14 + $0x8] sm:$0xff] }
 0x1e4   : > { %1163 = vmax.xlane.f32.xlu2 %v1162_v51  ;;  %1294 = vmatpush.bf16.msrb.mxu3 %v2178_v49  ;;  %v2180_v51 = vld [vmem:[%s2496_s24 + $0x8] sm:$0xff] }
 0x1e5   : > { %2293 = vpow2.f32 %v1039_v50  ;;  %v2177_v50 = vld [vmem:[%s2854_s14] sm:$0xff] }
 0x1e8   : > { %v1160_v52 = vpop.f32.mrf.mxu3  ;;  %1295 = vmatpush.bf16.msrb.mxu3 %v2177_v50 }
 0x1e9   : > { %v2182_v52 = vld [vmem:[%s2501_s30 + $0x8] sm:$0xff] }
 0x1ea   : > { %v1220_v53 = vpop.f32.mrf.mxu1  ;;  %1364 = vmatpush.bf16.msra.mxu1 %v2182_v52 }
 0x1eb   : > { %v2294_v54 = vpop.eup %2293  ;;  %v1221_v55 = vadd.f32 %v1220_v53, %v908_v35  ;;  %v2184_v53 = vld [vmem:[%s2855_s6 + $0x8] sm:$0xff]  ;;  %s2878_s6 = sld [smem:[#allocation23_spill]] }
 0x1ec   : > { %v1041_v56 = vsel %vm1015_vm1, %v2294_v54, 0.0 }
 0x1ed   : > { %1042 = vadd.xlane.f32.xlu2 %v1041_v56  ;;  %v1224_v57 = vsel %vm1015_vm1, %v1221_v55, -inf }
 0x1ee   : > { %1225 = vmax.xlane.f32.xlu0 %v1224_v57  ;;  %1365 = vmatpush.bf16.msra.mxu1 %v2181_v60 }
 0x1f2   : > { %v1222_v58 = vpop.f32.mrf.mxu1 }
 0x251   : > { %v1099_v1 = vpop.xlane.xlu1 %1098 }
 0x252   : > { %v1100_v2 = vsub.f32 %v1094_v43, %v1099_v1 }
 0x254   : > { %v1101_v3 = vmul.f32 1.442695, %v1100_v2 }
 0x256   : > { %2295 = vpow2.f32 %v1101_v3 }
 0x257   : > { %v1164_v5 = vpop.xlane.xlu2 %1163 }
 0x258   : > { %v1165_v6 = vsub.f32 %v1159_v47, %v1164_v5 }
 0x25a   : > { %v1166_v7 = vmul.f32 1.442695, %v1165_v6 }
 0x25c   : > { %v2296_v8 = vpop.eup %2295  ;;  %2297 = vpow2.f32 %v1166_v7 }
 0x25d   : > { %v1103_v9 = vsel %vm1015_vm1, %v2296_v8, 0.0 }
 0x25e   : > { %1104 = vadd.xlane.f32.xlu1 %v1103_v9 }
 0x260   : > { %v1043_v10 = vpop.xlane.xlu2 %1042 }
 0x261   : > { %2299 = vrcp.f32 %v1043_v10  ;;  %v1226_v11 = vpop.xlane.xlu0 %1225 }
 0x262   : > { %v2298_v12 = vpop.eup %2297  ;;  %v1227_v13 = vsub.f32 %v1221_v55, %v1226_v11 }
 0x263   : > { %v1168_v14 = vsel %vm1015_vm1, %v2298_v12, 0.0 }
 0x264   : > { %v1228_v15 = vmul.f32 1.442695, %v1227_v13  ;;  %1169 = vadd.xlane.f32.xlu0 %v1168_v14 }
 0x266   : > { %2301 = vpow2.f32 %v1228_v15 }
 0x267   : > { %v2300_v16 = vpop.eup %2299 }
 0x268   : > { %v1045_v17 = vmul.f32 %v2300_v16, %v2294_v54 }
 0x26a   : > { %v1046_v18 = vpack.c.bf16 %v1045_v17, %v1045_v17 }
 0x26c   : > { %v2302_v19 = vpop.eup %2301  ;;  %2057 = vmatmul.msk.bf16.vlgmr.msrb.gmra.mxu0 %vm1015_vm1, %v1046_v18 }
 0x26d   : > { %v1230_v20 = vsel %vm1015_vm1, %v2302_v19, 0.0 }
 0x26e   : > { %1231 = vadd.xlane.f32.xlu2 %v1230_v20 }
 0x277   : > { %1112 = vrot.lane.b32.xlu1 %v1111_v22, %s2826_s2  ;;  %s2828_s2 = smov 24  }
 0x278   : > { %1174 = vrot.lane.b32.xlu0 %v1111_v22, %s2425_s23 }
 0x286   : > { %1236 = vrot.lane.b32.xlu2 %v1111_v22, %s2824_s16  ;;  %s2829_s16 = smov 16  }
 0x2d1   : > { %v1105_v23 = vpop.xlane.xlu1 %1104 }
 0x2d2   : > { %2303 = vrcp.f32 %v1105_v23 }
 0x2d7   : > { %v1170_v24 = vpop.xlane.xlu0 %1169 }
 0x2d8   : > { %2305 = vrcp.f32 %v1170_v24  ;;  %v2304_v26 = vpop.eup %2303 }
 0x2d9   : > { %v1107_v28 = vmul.f32 %v2304_v26, %v2296_v8 }
 0x2db   : > { %v1108_v37 = vpack.c.bf16 %v1107_v28, %v1107_v28 }
 0x2de   : > { %v2306_v27 = vpop.eup %2305 }
 0x2df   : > { %v1172_v29 = vmul.f32 %v2306_v27, %v2298_v12 }
 0x2e1   : > { %v1232_v25 = vpop.xlane.xlu2 %1231  ;;  %v1173_v38 = vpack.c.bf16 %v1172_v29, %v1172_v29 }
 0x2e2   : > { %2307 = vrcp.f32 %v1232_v25 }
 0x2e8   : > { %v2308_v40 = vpop.eup %2307 }
 0x2e9   : > { %v1113_v30 = vpop.permute.xlu1 %1112  ;;  %v1063_v31 = vpop.f32.mrf.mxu0  ;;  %v1234_v41 = vmul.f32 %v2308_v40, %v2302_v19 }
 0x2ea   : > { %1067 = vst.msk [vmem:[#allocation2] sm:$0xff] %vm1015_vm1, %v1063_v31  ;;  %v1237_v32 = vpop.permute.xlu2 %1236  ;;  %v1175_v33 = vpop.permute.xlu0 %1174  ;;  %v1118_v34 = vsel %vm1050_vm3, %v1113_v30, 0 }
 0x2eb   : > { %v1242_v35 = vsel %vm1050_vm3, %v1237_v32, 0  ;;  %v1180_v36 = vsel %vm1050_vm3, %v1175_v33, 0  ;;  %1127 = vmatpush.bf16.msrb.mxu2 %v1118_v34  ;;  %v1235_v42 = vpack.c.bf16 %v1234_v41, %v1234_v41 }
 0x2ec   : > { %1189 = vmatpush.bf16.msra.mxu0 %v1180_v36 }
 0x2ee   : > { %2059 = vmatmul.msk.bf16.vlgmr.msrb.gmra.mxu2 %vm1015_vm1, %v1108_v37 }
 0x2ef   : > { %1251 = vmatpush.bf16.msra.mxu2 %v1242_v35  ;;  %2061 = vmatmul.msk.bf16.vlgmr.msra.gmra.mxu0 %vm1015_vm1, %v1173_v38 }
 0x2f0   : > { %1331 = vmatpush.bf16.msrb.mxu0 %v2180_v51 }
 0x2f1   : > { %v1065_v39 = vpop.f32.mrf.mxu0 }
 0x2f3   : > { %1397 = vmatpush.bf16.msrb.mxu2 %v2184_v53 }
 0x2f4   : > { %1332 = vmatpush.bf16.msrb.mxu0 %v2179_v59 }
 0x2f7   : > { %1398 = vmatpush.bf16.msrb.mxu2 %v2183_v61 }
 0x2fe   : > { %2063 = vmatmul.msk.bf16.vlgmr.msra.gmra.mxu2 %vm1015_vm1, %v1235_v42 }
 0x36c   : > { %v1191_v43 = vpop.f32.mrf.mxu0 }
 0x371   : > { %v1129_v44 = vpop.f32.mrf.mxu2 }
 0x372   : > { %1134 = vrot.lane.b32.xlu1 %v1129_v44, %s2830_s22  ;;  %s2865_s22 = sld [smem:[#allocation15_spill]] }
 0x374   : > { %v1193_v45 = vpop.f32.mrf.mxu0 }
 0x378   : > { %v2284_v12 = vld [vmem:[%s2865_s22] ss:$0 sm:$0xff]  ;;  %s2869_s22 = smov 8  }
 0x379   : > { %v1131_v46 = vpop.f32.mrf.mxu2 }
 0x37a   : > { %1196 = vrot.lane.b32.xlu1 %v1191_v43, %s2829_s16  ;;  %s2864_s16 = sld [smem:[#allocation14_spill]] }
 0x380   : > { %v2283_v5 = vld [vmem:[%s2864_s16] ss:$0 sm:$0xff]  ;;  %s2867_s16 = smov 104  }
 0x381   : > { %v1253_v47 = vpop.f32.mrf.mxu2 }
 0x382   : > { %1258 = vrot.lane.b32.xlu0 %v1253_v47, %s2828_s2  ;;  %s2863_s2 = sld [smem:[#allocation13_spill]] }
 0x388   : > { %v2282_v3 = vld [vmem:[%s2863_s2] ss:$0 sm:$0xff]  ;;  %s2866_s2 = smov 120  }
 0x389   : > { %v1255_v48 = vpop.f32.mrf.mxu2 }
 0x3e4   : > { %v1135_v54 = vpop.permute.xlu1 %1134 }
 0x3e5   : > { %1138 = vst.msk [vmem:[#allocation2] sm:$0xff] %vm1137_vm4, %v1135_v54 }
 0x3ec   : > { %v1197_v55 = vpop.permute.xlu1 %1196 }
 0x3ed   : > { %1200 = vst.msk [vmem:[#allocation2] sm:$0xff] %vm1199_vm5, %v1197_v55 }
 0x3f4   : > { %v1259_v56 = vpop.permute.xlu0 %1258 }
 0x3f5   : > { %1262 = vst.msk [vmem:[#allocation2] sm:$0xff] %vm1261_vm6, %v1259_v56 }
 0x3fc   : > { %v1263_v57 = vld [vmem:[#allocation2] sm:$0xff] }
 0x3fd   : > { %v1264_v58 = vpack.c.bf16 %v1263_v57, %v1263_v57 }
 0x3ff   : > { %2072 = vmatmul.msk.bf16.vlgmr.msrb.gmra.mxu3 %vm929_vm0, %v1264_v58 }
 0x482   : > { %v1297_v63 = vpop.f32.mrf.mxu3 }
 0x483   : > { %v1298_v0 = vadd.f32 %v2281_v62, %v1297_v63 }
 0x485   : > { %v1301_v1 = vpack.c.bf16 %v1298_v0, %v1298_v0 }
 0x487   : > { %2081 = vmatmul.msk.bf16.vlgmr.msrb.gmra.mxu0 %vm929_vm0, %v1301_v1  ;;  %2090 = vmatmul.msk.bf16.vlgmr.msra.gmra.mxu1 %vm929_vm0, %v1301_v1 }
 0x488   : > { %2099 = vmatmul.msk.bf16.vlgmr.msrb.gmra.mxu2 %vm929_vm0, %v1301_v1 }
 0x48a   : > { %v1299_v2 = vpop.f32.mrf.mxu3 }
 0x504   : > { %v1334_v6 = vpop.f32.mrf.mxu0  ;;  %v1367_v7 = vpop.f32.mrf.mxu1 }
 0x505   : > { %v1335_v8 = vadd.f32 %v2282_v3, %v1334_v6  ;;  %v1368_v9 = vadd.f32 %v2283_v5, %v1367_v7 }
 0x507   : > { %v1404_v10 = vpack.c.bf16 %v1335_v8, %v1335_v8  ;;  %v1405_v11 = vpack.c.bf16 %v1368_v9, %v1368_v9 }
 0x509   : > { %v1459_v13 = vunpack.c.l.b16 %v1404_v10  ;;  %v1411_v14 = vsel %vm1015_vm1, %v1405_v11, 0  ;;  %v1464_v15 = vunpack.c.l.b16 %v1405_v11 }
 0x50a   : > { %1420 = vmatpush.bf16.xpose.msra.mxu3 %v1411_v14 }
 0x50b   : > { %v1460_v16 = vpack.c.b16 %v1459_v13, %v1459_v13  ;;  %v1465_v17 = vpack.c.b16 %v1464_v15, %v1464_v15  ;;  %v1400_v18 = vpop.f32.mrf.mxu2 }
 0x50c   : > { %v1401_v19 = vadd.f32 %v2284_v12, %v1400_v18  ;;  %v1336_v20 = vpop.f32.mrf.mxu0  ;;  %v1369_v21 = vpop.f32.mrf.mxu1 }
 0x50d   : > { %1530 = vrot.lane.b32.xlu0 %v1465_v17, %s2425_s23  ;;  %1466 = vrot.lane.b32.xlu2 %v1465_v17, %s2866_s2 }
 0x50e   : > { %v1406_v22 = vpack.c.bf16 %v1401_v19, %v1401_v19  ;;  %1461 = vrot.lane.b32.xlu1 %v1460_v16, %s2866_s2 }
 0x510   : > { %v1442_v23 = vsel %vm1050_vm3, %v1406_v22, 0  ;;  %v1500_v51 = vunpack.c.l.b16 %v1406_v22 }
 0x511   : > { %1451 = vmatpush.bf16.msra.mxu0 %v1442_v23  ;;  %2100 = vmatmul.msk.bf16.vlgmr.msra.gmra.mxu3 %vm1015_vm1, %v1404_v10 }
 0x512   : > { %v1501_v52 = vpack.c.b16 %v1500_v51, %v1500_v51 }
 0x513   : > { %v1402_v24 = vpop.f32.mrf.mxu2 }
 0x515   : > { %1591 = vrot.lane.b32.xlu2 %v1465_v17, %s2867_s16  ;;  %1589 = vrot.lane.b32.xlu0 %v1460_v16, %s2867_s16 }
 0x516   : > { %1528 = vrot.lane.b32.xlu1 %v1460_v16, %s2425_s23 }
 0x567   : > { %v1467_v25 = vpop.permute.xlu2 %1466 }
 0x568   : > { %v1472_v26 = vsel %vm1015_vm1, %v1467_v25, 0 }
 0x569   : > { %1481 = vmatpush.bf16.xpose.msrb.mxu1 %v1472_v26 }
 0x56f   : > { %v1592_v27 = vpop.permute.xlu2 %1591 }
 0x570   : > { %v1597_v28 = vsel %vm1015_vm1, %v1592_v27, 0 }
 0x571   : > { %1606 = vmatpush.bf16.xpose.msra.mxu1 %v1597_v28 }
 0x57f   : > { %v1531_v29 = vpop.permute.xlu0 %1530 }
 0x580   : > { %v1536_v30 = vsel %vm1015_vm1, %v1531_v29, 0  ;;  %v1462_v31 = vpop.permute.xlu1 %1461 }
 0x581   : > { %2102 = vmatmul.msk.bf16.vlgmr.msrb.gmra.mxu1 %vm1015_vm1, %v1462_v31  ;;  %1545 = vmatpush.bf16.xpose.msrb.mxu3 %v1536_v30 }
 0x587   : > { %v1590_v33 = vpop.permute.xlu0 %1589 }
 0x588   : > { %v1529_v32 = vpop.permute.xlu1 %1528 }
 0x589   : > { %2104 = vmatmul.msk.bf16.vlgmr.msrb.gmra.mxu3 %vm1015_vm1, %v1529_v32 }
 0x591   : > { %2106 = vmatmul.msk.bf16.vlgmr.msra.gmra.mxu1 %vm1015_vm1, %v1590_v33 }
 0x594   : > { %v1422_v34 = vpop.f32.mrf.mxu3 }
 0x595   : > { %v1426_v35 = vsel %vm1015_vm1, %v1422_v34, -inf }
 0x596   : > { %1427 = vmax.xlane.f32.xlu1 %v1426_v35 }
 0x59c   : > { %v1424_v36 = vpop.f32.mrf.mxu3 }
 0x5fe   : > { %v1483_v37 = vpop.f32.mrf.mxu1 }
 0x5ff   : > { %v1487_v38 = vsel %vm1015_vm1, %v1483_v37, -inf }
 0x600   : > { %1488 = vmax.xlane.f32.xlu2 %v1487_v38 }
 0x606   : > { %v1485_v39 = vpop.f32.mrf.mxu1 }
 0x609   : > { %v1428_v40 = vpop.xlane.xlu1 %1427 }
 0x60a   : > { %v1429_v41 = vsub.f32 %v1422_v34, %v1428_v40 }
 0x60c   : > { %v1430_v42 = vmul.f32 1.442695, %v1429_v41  ;;  %v1547_v43 = vpop.f32.mrf.mxu3 }
 0x60d   : > { %v1551_v44 = vsel %vm1015_vm1, %v1547_v43, -inf }
 0x60e   : > { %2309 = vpow2.f32 %v1430_v42  ;;  %v1608_v45 = vpop.f32.mrf.mxu1  ;;  %1552 = vmax.xlane.f32.xlu2 %v1551_v44  ;;  %v2285_v42 = vld [vmem:[%s2872_s3] ss:$0 sm:$0xff]  ;;  %s2875_s3 = sld [smem:[#allocation18_spill]] }
 0x60f   : > { %v1612_v46 = vsel %vm1015_vm1, %v1608_v45, -inf }
 0x610   : > { %1613 = vmax.xlane.f32.xlu0 %v1612_v46 }
 0x614   : > { %v2310_v47 = vpop.eup %2309  ;;  %v1549_v48 = vpop.f32.mrf.mxu3 }
 0x615   : > { %v1432_v49 = vsel %vm1015_vm1, %v2310_v47, 0.0  ;;  %v2432_v48 = vmov 32.0  }
 0x616   : > { %v1610_v50 = vpop.f32.mrf.mxu1 }
 0x618   : > { %1433 = vadd.xlane.f32.xlu0 %v1432_v49 }
 0x626   : > { %1502 = vrot.lane.b32.xlu2 %v1501_v52, %s2866_s2  ;;  %s2870_s2 = smov 16  }
 0x673   : > { %v1489_v53 = vpop.xlane.xlu2 %1488 }
 0x674   : > { %v1490_v54 = vsub.f32 %v1483_v37, %v1489_v53 }
 0x676   : > { %v1491_v55 = vmul.f32 1.442695, %v1490_v54 }
 0x678   : > { %2311 = vpow2.f32 %v1491_v55 }
 0x67e   : > { %v2312_v56 = vpop.eup %2311 }
 0x67f   : > { %v1493_v57 = vsel %vm1015_vm1, %v2312_v56, 0.0 }
 0x680   : > { %1494 = vadd.xlane.f32.xlu1 %v1493_v57 }
 0x681   : > { %v1553_v58 = vpop.xlane.xlu2 %1552 }
 0x682   : > { %v1554_v59 = vsub.f32 %v1547_v43, %v1553_v58 }
 0x683   : > { %v1614_v60 = vpop.xlane.xlu0 %1613 }
 0x684   : > { %v1555_v61 = vmul.f32 1.442695, %v1554_v59  ;;  %v1615_v62 = vsub.f32 %v1608_v45, %v1614_v60 }
 0x686   : > { %2313 = vpow2.f32 %v1555_v61  ;;  %v1616_v63 = vmul.f32 1.442695, %v1615_v62 }
 0x688   : > { %2315 = vpow2.f32 %v1616_v63 }
 0x689   : > { %v1503_v0 = vpop.permute.xlu2 %1502 }
 0x68a   : > { %v1508_v1 = vsel %vm1050_vm3, %v1503_v0, 0 }
 0x68b   : > { %v1434_v2 = vpop.xlane.xlu0 %1433  ;;  %1517 = vmatpush.bf16.msra.mxu2 %v1508_v1 }
 0x68c   : > { %v2314_v3 = vpop.eup %2313  ;;  %2317 = vrcp.f32 %v1434_v2 }
 0x68d   : > { %v1557_v5 = vsel %vm1015_vm1, %v2314_v3, 0.0 }
 0x68e   : > { %v2316_v6 = vpop.eup %2315  ;;  %1558 = vadd.xlane.f32.xlu0 %v1557_v5 }
 0x68f   : > { %v1618_v7 = vsel %vm1015_vm1, %v2316_v6, 0.0 }
 0x690   : > { %1619 = vadd.xlane.f32.xlu1 %v1618_v7 }
 0x692   : > { %v2318_v8 = vpop.eup %2317 }
 0x693   : > { %v1436_v9 = vmul.f32 %v2318_v8, %v2310_v47 }
 0x695   : > { %v1437_v10 = vpack.c.bf16 %v1436_v9, %v1436_v9 }
 0x697   : > { %2101 = vmatmul.msk.bf16.vlgmr.msra.gmra.mxu0 %vm1015_vm1, %v1437_v10 }
 0x6a2   : > { %1563 = vrot.lane.b32.xlu0 %v1501_v52, %s2425_s23  ;;  %s2868_s23 = sld [smem:[#allocation16_spill]] }
 0x6a8   : > { %v2186_v37 = vld [vmem:[%s2868_s23 + $0x8] sm:$0xff]  ;;  %v2185_v38 = vld [vmem:[%s2868_s23] sm:$0xff] }
 0x6a9   : > { %1624 = vrot.lane.b32.xlu1 %v1501_v52, %s2867_s16  ;;  %s2871_s16 = smov 24   ;;  %1681 = vmatpush.bf16.msra.mxu3 %v2186_v37 }
 0x6ad   : > { %1682 = vmatpush.bf16.msra.mxu3 %v2185_v38 }
 0x6f3   : > { %v1495_v11 = vpop.xlane.xlu1 %1494 }
 0x6f4   : > { %2319 = vrcp.f32 %v1495_v11 }
 0x6fa   : > { %v2320_v12 = vpop.eup %2319 }
 0x6fb   : > { %v1497_v13 = vmul.f32 %v2320_v12, %v2312_v56 }
 0x6fd   : > { %v1498_v14 = vpack.c.bf16 %v1497_v13, %v1497_v13  ;;  %v2286_v13 = vld [vmem:[%s2875_s3] ss:$0 sm:$0xff]  ;;  %s2168_s3 = sshll.u32 %s2609_s0, 3  ;;  %s2351_s0 = scalar_lea.hbm %s2586_s4, 16 }
 0x6ff   : > { %2103 = vmatmul.msk.bf16.vlgmr.msra.gmra.mxu2 %vm1015_vm1, %v1498_v14 }
 0x701   : > { %v1559_v15 = vpop.xlane.xlu0 %1558 }
 0x702   : > { %2321 = vrcp.f32 %v1559_v15 }
 0x703   : > { %v1620_v16 = vpop.xlane.xlu1 %1619 }
 0x704   : > { %2323 = vrcp.f32 %v1620_v16 }
 0x705   : > { %2325 = vrcp.f32 %v2432_v48 }
 0x708   : > { %v2322_v17 = vpop.eup %2321 }
 0x709   : > { %v1561_v18 = vmul.f32 %v2322_v17, %v2314_v3 }
 0x70a   : > { %v2324_v22 = vpop.eup %2323 }
 0x70b   : > { %v1562_v23 = vpack.c.bf16 %v1561_v18, %v1561_v18  ;;  %v1622_v24 = vmul.f32 %v2324_v22, %v2316_v6  ;;  %v2326_v49 = vpop.eup %2325  ;;  %v2288_v22 = vld [vmem:[%s2877_s5] ss:$0 sm:$0xff]  ;;  %s2879_s5 = sld [smem:[#allocation24_spill]] }
 0x70c   : > { %v1695_v50 = vmul.f32 32.0, %v2326_v49  ;;  %vm1699_vm7 = vweird.f32 %v2326_v49 }
 0x70d   : > { %v1623_v28 = vpack.c.bf16 %v1622_v24, %v1622_v24 }
 0x70e   : > { %v1696_v51 = vsub.f32 1.0, %v1695_v50 }
 0x710   : > { %v1697_v52 = vmul.f32 %v2326_v49, %v1696_v51 }
 0x711   : > { %v2290_v50 = vld [vmem:[%s2879_s5] ss:$0 sm:$0xff] }
 0x712   : > { %v1698_v53 = vadd.f32 %v2326_v49, %v1697_v52 }
 0x714   : > { %v1564_v19 = vpop.permute.xlu0 %1563  ;;  %v1453_v20 = vpop.f32.mrf.mxu0  ;;  %v2764_v54 = vsel %vm1699_vm7, %v2326_v49, %v1698_v53  ;;  %v2291_v53 = vld [vmem:[%s2880_s12] ss:$0 sm:$0xff] }
 0x715   : > { %v1569_v21 = vsel %vm1050_vm3, %v1564_v19, 0  ;;  %1457 = vst.msk [vmem:[#allocation2] sm:$0xff] %vm1015_vm1, %v1453_v20 }
 0x716   : > { %1578 = vmatpush.bf16.msrb.mxu0 %v1569_v21 }
 0x719   : > { %2105 = vmatmul.msk.bf16.vlgmr.msrb.gmra.mxu0 %vm1015_vm1, %v1562_v23 }
 0x71b   : > { %v1625_v25 = vpop.permute.xlu1 %1624 }
 0x71c   : > { %v1630_v26 = vsel %vm1050_vm3, %v1625_v25, 0  ;;  %v1455_v27 = vpop.f32.mrf.mxu0 }
 0x71d   : > { %1639 = vmatpush.bf16.msrb.mxu2 %v1630_v26 }
 0x720   : > { %2107 = vmatmul.msk.bf16.vlgmr.msrb.gmra.mxu2 %vm1015_vm1, %v1623_v28  ;;  %v2289_v28 = vld [vmem:[%s2878_s6] ss:$0 sm:$0xff]  ;;  %s891_s6 = sand.u32 1, %s2385_s10  }
 0x721   : > { %s1920_s12 = scalar_lea.sflag [#allocation4], %s891_s6 }
 0x782   : > { %v1519_v29 = vpop.f32.mrf.mxu2 }
 0x783   : > { %1524 = vrot.lane.b32.xlu2 %v1519_v29, %s2869_s22  ;;  %s2873_s22 = sld [smem:[#allocation20_spill]] }
 0x789   : > { %v2188_v59 = vld [vmem:[%s2873_s22 + $0x8] sm:$0xff]  ;;  %v2187_v60 = vld [vmem:[%s2873_s22] sm:$0xff] }
 0x78a   : > { %v1521_v30 = vpop.f32.mrf.mxu2  ;;  %1758 = vmatpush.bf16.msra.mxu0 %v2188_v59 }
 0x78e   : > { %1759 = vmatpush.bf16.msra.mxu0 %v2187_v60 }
 0x796   : > { %v1580_v31 = vpop.f32.mrf.mxu0 }
 0x797   : > { %1585 = vrot.lane.b32.xlu2 %v1580_v31, %s2870_s2  ;;  %s2874_s2 = sld [smem:[#allocation22_spill]] }
 0x79d   : > { %v2196_v61 = vld [vmem:[%s2874_s2 + $0x38] sm:$0xff]  ;;  %v2195_v0 = vld [vmem:[%s2874_s2 + $0x30] sm:$0xff]  ;;  %v2194_v2 = vld [vmem:[%s2874_s2 + $0x28] sm:$0xff] }
 0x79e   : > { %v1582_v32 = vpop.f32.mrf.mxu0  ;;  %1835 = vmatpush.bf16.msrb.mxu1 %v2196_v61  ;;  %v2193_v3 = vld [vmem:[%s2874_s2 + $0x20] sm:$0xff]  ;;  %v2192_v7 = vld [vmem:[%s2874_s2 + $0x18] sm:$0xff]  ;;  %v2191_v10 = vld [vmem:[%s2874_s2 + $0x10] sm:$0xff] }
 0x79f   : > { %v2190_v20 = vld [vmem:[%s2874_s2 + $0x8] sm:$0xff]  ;;  %v2189_v21 = vld [vmem:[%s2874_s2] sm:$0xff]  ;;  %s1930_s2 = scalar_lea.hbm %s2586_s4, %s2168_s3 }
 0x7a0   : > { %s1934_s5 = sshll.u32 %s1930_s2, 4  ;;  %s1935_s5 = int_to_ptr.hbm [resolvable:$true] %s1934_s5 }
 0x7a1   : > { %s2345_s13 = sshra.s32 %s1935_s5, 4  ;;  %s2346_s13 = int_to_ptr.hbm [resolvable:$true] %s2345_s13 }
 0x7a2   : > { %1836 = vmatpush.bf16.msrb.mxu1 %v2195_v0  ;;  %s2347_s14 = scalar_lea.hbm %s2346_s13, 8  ;;  %p2352_p0 = scmp.lt.s32.totalorder %s2346_s13, %s2586_s4 }
 0x7a3   : > { %v1641_v33 = vpop.f32.mrf.mxu2  ;;  %p2348_p11 = scmp.ne.s32.totalorder %s2346_s13, %s2347_s14  ;;  %p2353_p1 = scmp.lt.s32.totalorder %s2351_s0, %s2347_s14 }
 0x7a4   : > { %1646 = vrot.lane.b32.xlu0 %v1641_v33, %s2871_s16  ;;  %s2876_s16 = sld [smem:[#allocation19_spill]] }
 0x7a5   : > { %p2349_p12 = pnand %p2348_p11, %p2626_p5  ;;  %p2354_p2 = por %p2353_p1, %p2352_p0 }
 0x7a6   : > { %1837 = vmatpush.bf16.msrb.mxu1 %v2194_v2 }
 0x7a7   : > { %p2350_p13 = pneg %p2349_p12 }
 0x7a9   : > { %p2355_p3 = pnand %p2354_p2, %p2350_p13 }
 0x7aa   : > { %1838 = vmatpush.bf16.msrb.mxu1 %v2193_v3  ;;  %v2287_v15 = vld [vmem:[%s2876_s16] ss:$0 sm:$0xff]  ;;  %s2027_s16 = sshll.u32 %s891_s6, 3 }
 0x7ab   : > { %v1643_v34 = vpop.f32.mrf.mxu2  ;;  %s893_s8 = scalar_lea.vmem [#allocation3], %s2027_s16 }
 0x7ac   : > { %s1932_s9 = sshll.u32 %s893_s8, 4  ;;  %s1933_s9 = int_to_ptr.vmem [resolvable:$true] %s1932_s9 }
 0x7ae   : > { %1839 = vmatpush.bf16.msrb.mxu1 %v2192_v7 }
 0x7b2   : > { %1840 = vmatpush.bf16.msrb.mxu1 %v2191_v10 }
 0x7b6   : > { %1841 = vmatpush.bf16.msrb.mxu1 %v2190_v20 }
 0x7ba   : > { %1842 = vmatpush.bf16.msrb.mxu1 %v2189_v21 }
 0x7dd   : > { %v1525_v35 = vpop.permute.xlu2 %1524 }
 0x7de   : > { %1527 = vst.msk [vmem:[#allocation2] sm:$0xff] %vm1137_vm4, %v1525_v35 }
 0x7f1   : > { %v1586_v36 = vpop.permute.xlu2 %1585 }
 0x7f2   : > { %1588 = vst.msk [vmem:[#allocation2] sm:$0xff] %vm1199_vm5, %v1586_v36 }
 0x816   : > { %v1647_v39 = vpop.permute.xlu0 %1646 }
 0x817   : > { %1649 = vst.msk [vmem:[#allocation2] sm:$0xff] %vm1261_vm6, %v1647_v39  ;;  %v2198_v39 = vld [vmem:[%s2576_s20 + $0x8] sm:$0xff] }
 0x818   : > { %1911 = vmatpush.bf16.msra.mxu2 %v2198_v39 }
 0x81e   : > { %v1650_v40 = vld [vmem:[#allocation2] sm:$0xff] }
 0x81f   : > { %v1651_v41 = vpack.c.bf16 %v1650_v40, %v1650_v40  ;;  %v2197_v40 = vld [vmem:[%s2576_s20] sm:$0xff] }
 0x820   : > { %1912 = vmatpush.bf16.msra.mxu2 %v2197_v40 }
 0x821   : > { %2116 = vmatmul.msk.bf16.vlgmr.msra.gmra.mxu3 %vm929_vm0, %v1651_v41 }
 0x8a4   : > { %v1684_v43 = vpop.f32.mrf.mxu3 }
 0x8a5   : > { %v1685_v44 = vadd.f32 %v2285_v42, %v1684_v43 }
 0x8a7   : > { %v1688_v45 = vadd.f32 %v1685_v44, %v2643_v4 }
 0x8a9   : > { %v1691_v46 = vsel %vm929_vm0, %v1688_v45, 0.0 }
 0x8aa   : > { %1692 = vadd.xlane.f32.xlu1 %v1691_v46 }
 0x8ac   : > { %v1686_v47 = vpop.f32.mrf.mxu3 }
 0x91d   : > { %v1693_v55 = vpop.xlane.xlu1 %1692 }
 0x91e   : > { %v1701_v4 = vmul.f32 %v2764_v54, %v1693_v55 }
 0x920   : > { %v1702_v56 = vsub.f32 %v1688_v45, %v1701_v4 }
 0x922   : > { %v1703_v57 = vmul.f32 %v1702_v56, %v1702_v56 }
 0x924   : > { %v1704_v58 = vsel %vm929_vm0, %v1703_v57, 0.0 }
 0x925   : > { %1705 = vadd.xlane.f32.xlu2 %v1704_v58 }
 0x998   : > { %v1706_v62 = vpop.xlane.xlu2 %1705 }
 0x999   : > { %v1707_v63 = vmul.f32 %v1706_v62, %v2764_v54 }
 0x99b   : > { %v1708_v1 = vadd.f32 1e-05, %v1707_v63 }
 0x99d   : > { %2327 = vrsqrt.f32 %v1708_v1  ;;  %vm1715_vm9 = vweird.f32 %v1708_v1 }
 0x9a3   : > { %v2328_v5 = vpop.eup %2327 }
 0x9a4   : > { %v1710_v6 = vmul.f32 %v2328_v5, %v1708_v1  ;;  %vm1716_vm8 = vweird.f32 %v2328_v5 }
 0x9a5   : > { %vm1717_vm10 = vmor %vm1715_vm9, %vm1716_vm8 }
 0x9a6   : > { %v1711_v8 = vmul.f32 %v2328_v5, %v1710_v6 }
 0x9a8   : > { %v1712_v9 = vmul.f32 0.5, %v1711_v8 }
 0x9aa   : > { %v1713_v11 = vsub.f32 1.5, %v1712_v9 }
 0x9ac   : > { %v1714_v12 = vmul.f32 %v2328_v5, %v1713_v11 }
 0x9ae   : > { %v1718_v14 = vsel %vm1717_vm10, %v2328_v5, %v1714_v12 }
 0x9af   : > { %v1719_v16 = vmul.f32 %v1718_v14, %v1702_v56  ;;  %v2292_v56 = vld [vmem:[%s2581_s27] ss:$0 sm:$0xff] }
 0x9b1   : > { %v1723_v17 = vmul.f32 %v2286_v13, %v1719_v16 }
 0x9b3   : > { %v1727_v18 = vadd.f32 %v2287_v15, %v1723_v17 }
 0x9b5   : > { %v1728_v19 = vpack.c.bf16 %v1727_v18, %v1727_v18 }
 0x9b7   : > { %2125 = vmatmul.msk.bf16.vlgmr.msra.gmra.mxu0 %vm929_vm0, %v1728_v19 }
 0xa34   : > { %v1761_v23 = vpop.f32.mrf.mxu0 }
 0xa35   : > { %v1762_v24 = vadd.f32 %v2288_v22, %v1761_v23 }
 0xa37   : > { %v1765_v25 = vmax.f32 %v1762_v24, 0.0 }
 0xa39   : > { %v1766_v26 = vpack.c.bf16 %v1765_v25, %v1765_v25 }
 0xa3b   : > { %1843 = vmatmul.bf16.vlgmr.msrb.gmra.mxu1 %v1766_v26 }
 0xa3c   : > { %v1763_v27 = vpop.f32.mrf.mxu0 }
 0xab8   : > { %v1844_v29 = vpop.f32.mrf.mxu1 }
 0xab9   : > { %v1845_v30 = vadd.f32 %v2289_v28, %v1844_v29 }
 0xabb   : > { %v1848_v31 = vadd.f32 %v1845_v30, %v1727_v18 }
 0xabd   : > { %v1851_v32 = vsel %vm929_vm0, %v1848_v31, 0.0 }
 0xabe   : > { %1852 = vadd.xlane.f32.xlu0 %v1851_v32 }
 0xac0   : > { %v1846_v33 = vpop.f32.mrf.mxu1 }
 0xb31   : > { %v1853_v34 = vpop.xlane.xlu0 %1852 }
 0xb32   : > { %v1854_v35 = vmul.f32 %v1853_v34, %v2764_v54 }
 0xb34   : > { %v1855_v36 = vsub.f32 %v1848_v31, %v1854_v35 }
 0xb36   : > { %v1856_v37 = vmul.f32 %v1855_v36, %v1855_v36 }
 0xb38   : > { %v1857_v38 = vsel %vm929_vm0, %v1856_v37, 0.0 }
 0xb39   : > { %1858 = vadd.xlane.f32.xlu1 %v1857_v38 }
 0xbac   : > { %v1859_v41 = vpop.xlane.xlu1 %1858 }
 0xbad   : > { %v1860_v42 = vmul.f32 %v1859_v41, %v2764_v54 }
 0xbaf   : > { %v1861_v43 = vadd.f32 1e-05, %v1860_v42 }
 0xbb1   : > { %2329 = vrsqrt.f32 %v1861_v43  ;;  %vm1868_vm12 = vweird.f32 %v1861_v43 }
 0xbb7   : > { %v2330_v44 = vpop.eup %2329 }
 0xbb8   : > { %v1863_v45 = vmul.f32 %v2330_v44, %v1861_v43  ;;  %vm1869_vm11 = vweird.f32 %v2330_v44 }
 0xbb9   : > { %vm1870_vm13 = vmor %vm1868_vm12, %vm1869_vm11 }
 0xbba   : > { %v1864_v46 = vmul.f32 %v2330_v44, %v1863_v45 }
 0xbbc   : > { %v1865_v47 = vmul.f32 0.5, %v1864_v46 }
 0xbbe   : > { %v1866_v48 = vsub.f32 1.5, %v1865_v47 }
 0xbc0   : > { %v1867_v49 = vmul.f32 %v2330_v44, %v1866_v48 }
 0xbc2   : > { %v1871_v51 = vsel %vm1870_vm13, %v2330_v44, %v1867_v49 }
 0xbc3   : > { %v1872_v52 = vmul.f32 %v1871_v51, %v1855_v36 }
 0xbc5   : > { %v1876_v54 = vmul.f32 %v2290_v50, %v1872_v52 }
 0xbc7   : > { %v1880_v55 = vadd.f32 %v2291_v53, %v1876_v54 }
 0xbc9   : > { %v1881_v4 = vpack.c.bf16 %v1880_v55, %v1880_v55 }
 0xbcb   : > { %2166 = vmatmul.msk.bf16.vlgmr.msra.gmra.mxu2 %vm929_vm0, %v1881_v4 }
 0xc4e   : > { %v1914_v57 = vpop.f32.mrf.mxu2 }
 0xc4f   : > { %v1915_v58 = vadd.f32 %v2292_v56, %v1914_v57 }
 0xc51   : > { %1918 = vst [vmem:[%s893_s8] sm:$0xff] %v1915_v58 }
 0xc52   : > { %2358 = shalt.err (!%p2355_p3)
}
 0xc53   : > { %2199 = dma.vmem_to_hbm [thread:$0]  (%p2626_p5), %s1933_s9, 128, %s1935_s5, %s1920_s12  }
 0xc56   : > { %v1916_v59 = vpop.f32.mrf.mxu2 }
 0xc57 PF: > { %p2205_p4 = scmp.ge.s32.totalorder %s2393_s15, 2  ;;  %s1946_s8 = sand.u32 1, %s2381_s7  }
 0xc58   : > { %s1947_s2 = scalar_lea.sflag [#allocation4], %s1946_s8 }
 0xc59   : > { %p2202_p7 = pnand %p2205_p4, %p2630_p6 }
 0xc5b   : > { %p2203_p8 = pneg %p2202_p7 }
 0xc5d   : > { %2376 = dma.done.wait (%p2203_p8), %s1947_s2, 128  }
 0xc5e   : > { %2378 = vsyncadd (%p2203_p8), %s1947_s2, 4294967168  ;;  %p69_p9 = scmp.ge.s32.totalorder %s2613_s18, 4   ;;  %s2881_s7 = smov %s2385_s10 }
 0xc5f   : > { %s2882_s10 = smov %s2389_s11  ;;  %s2883_s11 = smov %s2624_s26 }
 0xc60   : > { %s2884_s15 = smov %s2613_s18  ;;  %71 = sbr.rel (!%p69_p9) target bundleno = 61 (0x3d), region = 200 }
 0xc65   :  { %1953 = vsyncpa [#allocation4], 1 }
 0xc66   :  { %1955 = vsyncpa [#allocation4 + $0x1], 1 }

</bundles_post_ra>
